<compile_context>
chip_gen: v7x
topology: tpu7x:2x2x1
jax: 0.10.0
libtpu: 0.0.40
codegen_flags: <defaults>
</compile_context>

<pallas_src>
from functools import partial

import jax
import jax.numpy as jnp
import numpy as np
from jax.experimental import pallas as pl
from jax.experimental.pallas import tpu as pltpu

# Full-accuracy f32 matmuls everywhere so the pure-JAX reference is a
# meaningful correctness check against the in-kernel f32 MXU dots.
jax.config.update("jax_default_matmul_precision", "highest")

HIDDEN = 32     # nn.LSTM(hidden_size=32) — fixed by the module spec (4H = 128)
V_PAD = 128     # one-hot contraction width (vocab padded to 128 lanes)
C_PAD = 128     # lane-dense FC output width


def lstm_kernel(int_ref, p_ref, out_ref, *, T, B, H, v_pad):
    """Whole sequence: fused input projection + recurrence + last-step gather + FC."""
    # Static views into the packed parameter slab (section starts are 8-aligned).
    table = p_ref[0:v_pad, :]                          # (V_PAD, 4H) emb@W_ih^T + b, [i,f,o,g]
    w_hh = p_ref[v_pad:v_pad + H, :]                   # (H, 4H), [i,f,o,g]
    w_fc = p_ref[v_pad + H:v_pad + 2 * H, :]           # (H, C_PAD)
    b_fc = p_ref[v_pad + 2 * H:v_pad + 2 * H + 1, :]   # (1, C_PAD)

    ids = int_ref[0:T * B, :]                          # (T*B, 1) int32, time-major tokens
    lens = int_ref[T * B:T * B + B, :]                 # (B, 1)  int32 sequence lengths

    # Frozen-embedding + input-projection + bias for ALL timesteps in ONE
    # matmul: one_hot(token) @ table == table[token] (exact, 0/1 selection).
    vocab_iota = jax.lax.broadcasted_iota(jnp.int32, (T * B, v_pad), 1)
    one_hot = (vocab_iota == ids).astype(jnp.float32)                       # (T*B, V_PAD)
    pre_all = jnp.dot(one_hot, table, preferred_element_type=jnp.float32)   # (T*B, 4H)

    h = jnp.zeros((B, H), jnp.float32)
    c = jnp.zeros((B, H), jnp.float32)
    last_h = jnp.zeros((B, H), jnp.float32)

    # Serial recurrence, fully unrolled (T small & static).  Per-step critical
    # chain: 1 MXU push (h @ W_hh) + 1 sigmoid(3H) + 2 tanh(H) + gate VPU ops.
    for t in range(T):
        gates = pre_all[t * B:(t + 1) * B, :] + jnp.dot(
            h, w_hh, preferred_element_type=jnp.float32)          # (B, 4H)
        sig = jax.nn.sigmoid(gates[:, :3 * H])                     # i|f|o in one EUP pass
        g_g = jnp.tanh(gates[:, 3 * H:])
        i_g = sig[:, :H]
        f_g = sig[:, H:2 * H]
        o_g = sig[:, 2 * H:3 * H]
        c = f_g * c + i_g * g_g
        h = o_g * jnp.tanh(c)
        # pack_padded equivalent: keep h at t == length-1 per batch row.
        # (Contract: 1 <= length <= T; out-of-range lengths never select.)
        last_h = jnp.where(lens == (t + 1), h, last_h)

    # Final Linear, lane-dense (C padded to 128) -> unmasked store.
    out_ref[...] = jnp.dot(last_h, w_fc,
                           preferred_element_type=jnp.float32) + b_fc


def prepare_params(emb_w, w_ih, w_hh, b_ih, b_hh, w_fc, b_fc):
    """One-time (model-init) constant preprocessing: fold + permute + pack."""
    vocab, _E = emb_w.shape
    H = w_hh.shape[1]
    C = w_fc.shape[0]
    assert H == HIDDEN and 4 * H == 128, "kernel packing assumes H=32 (4H=128)"
    assert vocab <= V_PAD and C <= C_PAD

    def to_ifog(a):  # (..., 4H) in PyTorch order [i, f, g, o] -> kernel [i, f, o, g]
        i, f, g, o = jnp.split(a, 4, axis=-1)
        return jnp.concatenate([i, f, o, g], axis=-1)

    # Fold frozen embedding, W_ih and both biases into one table (exact).
    table = (emb_w.astype(jnp.float32) @ w_ih.T.astype(jnp.float32)
             + (b_ih + b_hh)[None, :].astype(jnp.float32))          # (V, 4H)
    table = to_ifog(table)
    w_hh_t = to_ifog(w_hh.T.astype(jnp.float32))                     # (H, 4H)
    w_fc_t = w_fc.T.astype(jnp.float32)                              # (H, C)

    # Pack everything into one lane-dense f32 slab; sections start at
    # multiples of 8 rows: [table | W_hh^T | W_fc^T | b_fc | pad].
    slab = jnp.zeros((V_PAD + 2 * H + 8, 128), jnp.float32)
    slab = slab.at[:vocab, :4 * H].set(table)
    slab = slab.at[V_PAD:V_PAD + H, :4 * H].set(w_hh_t)
    slab = slab.at[V_PAD + H:V_PAD + 2 * H, :C].set(w_fc_t)
    slab = slab.at[V_PAD + 2 * H, :C].set(b_fc.astype(jnp.float32))
    return jax.device_put(slab)


@partial(jax.jit, static_argnums=(3,))
def run_testlstm(seqs, lengths, param_slab, num_categories):
    """seqs: (B, T, 1) int32 tokens; lengths: (B,) int32 (1 <= len <= T)."""
    B, T, _ = seqs.shape
    # Only per-call glue: time-major token column + lengths, one tiny int input.
    ids_tm = jnp.transpose(seqs[:, :, 0]).reshape(T * B, 1).astype(jnp.int32)
    int_col = jnp.concatenate(
        [ids_tm, lengths.astype(jnp.int32).reshape(B, 1)], axis=0)   # (T*B + B, 1)

    vmem = pl.BlockSpec(memory_space=pltpu.MemorySpace.VMEM)
    # NOTE(v7x): a gridless call uses one TensorCore; if many sequences were
    # batched per call, add a parallel grid axis to use both TCs.
    out_pad = pl.pallas_call(
        partial(lstm_kernel, T=T, B=B, H=HIDDEN, v_pad=V_PAD),
        out_shape=jax.ShapeDtypeStruct((B, C_PAD), jnp.float32),
        in_specs=[vmem, vmem],
        out_specs=vmem,
    )(int_col, param_slab)
    return out_pad[:, :num_categories]


def reference_jax(seqs, lengths, emb_w, w_ih, w_hh, b_ih, b_hh, w_fc, b_fc):
    """Pure-JAX reference mirroring the PyTorch forward (unfolded weights)."""
    B, T, _ = seqs.shape
    H = w_hh.shape[1]
    x = jnp.take(emb_w, seqs[:, :, 0], axis=0)            # (B, T, E)
    b = b_ih + b_hh

    def step(carry, x_t):
        h, c = carry
        gates = x_t @ w_ih.T + h @ w_hh.T + b
        i_g = jax.nn.sigmoid(gates[:, 0 * H:1 * H])
        f_g = jax.nn.sigmoid(gates[:, 1 * H:2 * H])
        g_g = jnp.tanh(gates[:, 2 * H:3 * H])
        o_g = jax.nn.sigmoid(gates[:, 3 * H:4 * H])
        c = f_g * c + i_g * g_g
        h = o_g * jnp.tanh(c)
        return (h, c), h

    h0 = jnp.zeros((B, H), jnp.float32)
    (_, _), hs = jax.lax.scan(step, (h0, h0), jnp.transpose(x, (1, 0, 2)))
    hs = jnp.transpose(hs, (1, 0, 2))                      # (B, T, H)
    last = hs[jnp.arange(B), lengths - 1]                  # (B, H)
    return last @ w_fc.T + b_fc


if __name__ == "__main__":
    B, T, E, H = 2, 8, 16, 32
    VOCAB, NUM_CATEGORIES = 50, 5

    key = jax.random.PRNGKey(0)
    k_emb, k_wih, k_whh, k_bih, k_bhh, k_wfc, k_bfc, k_seq = jax.random.split(key, 8)

    # Deterministic parameter init (synthetic; shapes match the nn.Module).
    emb_w = jax.random.normal(k_emb, (VOCAB, E), jnp.float32) * 0.5      # frozen embedding
    w_ih = jax.random.normal(k_wih, (4 * H, E), jnp.float32) * 0.1       # LSTM weight_ih_l0
    w_hh = jax.random.normal(k_whh, (4 * H, H), jnp.float32) * 0.1       # LSTM weight_hh_l0
    b_ih = jax.random.normal(k_bih, (4 * H,), jnp.float32) * 0.1         # LSTM bias_ih_l0
    b_hh = jax.random.normal(k_bhh, (4 * H,), jnp.float32) * 0.1         # LSTM bias_hh_l0
    w_fc = jax.random.normal(k_wfc, (NUM_CATEGORIES, H), jnp.float32) * 0.1
    b_fc = jax.random.normal(k_bfc, (NUM_CATEGORIES,), jnp.float32) * 0.1

    # One-time constant preprocessing (outside the per-call path).
    param_slab = prepare_params(emb_w, w_ih, w_hh, b_ih, b_hh, w_fc, b_fc)

    # Inputs: (seqs, lengths) with lengths sorted descending (pack_padded_sequence).
    seqs = jax.random.randint(k_seq, (B, T, 1), 0, VOCAB, dtype=jnp.int32)
    lengths = jnp.array([8, 5], dtype=jnp.int32)

    out = run_testlstm(seqs, lengths, param_slab, NUM_CATEGORIES)
    out = jax.block_until_ready(out)

    ref = reference_jax(seqs, lengths, emb_w, w_ih, w_hh, b_ih, b_hh, w_fc, b_fc)
    np.testing.assert_allclose(np.asarray(out), np.asarray(ref),
                               rtol=1e-4, atol=1e-4)

    print("KERNEL_OK")
</pallas_src>

<mosaic_0001>
module attributes {stable_mosaic.version = 11 : i64} {
  func.func @lstm_kernel(%arg0: memref<18x1xi32, #tpu.memory_space<vmem>>, %arg1: memref<200x128xf32, #tpu.memory_space<vmem>>, %arg2: memref<2x128xf32, #tpu.memory_space<vmem>>) attributes {dimension_semantics = [], scalar_prefetch = 0 : i64, scratch_operands = 0 : i64, tpu.core_type = #tpu.core_type<tc>} {
    %c0 = arith.constant 0 : index
    %c0_0 = arith.constant 0 : index
    %0 = vector.load %arg1[%c0, %c0_0] : memref<200x128xf32, #tpu.memory_space<vmem>>, vector<128x128xf32>
    %c128 = arith.constant 128 : index
    %c0_1 = arith.constant 0 : index
    %1 = vector.load %arg1[%c128, %c0_1] : memref<200x128xf32, #tpu.memory_space<vmem>>, vector<32x128xf32>
    %c160 = arith.constant 160 : index
    %c0_2 = arith.constant 0 : index
    %2 = vector.load %arg1[%c160, %c0_2] : memref<200x128xf32, #tpu.memory_space<vmem>>, vector<32x128xf32>
    %c192 = arith.constant 192 : index
    %c0_3 = arith.constant 0 : index
    %3 = vector.load %arg1[%c192, %c0_3] : memref<200x128xf32, #tpu.memory_space<vmem>>, vector<1x128xf32>
    %c0_4 = arith.constant 0 : index
    %c0_5 = arith.constant 0 : index
    %4 = vector.load %arg0[%c0_4, %c0_5] : memref<18x1xi32, #tpu.memory_space<vmem>>, vector<16x1xi32>
    %c16 = arith.constant 16 : index
    %c0_6 = arith.constant 0 : index
    %5 = vector.load %arg0[%c16, %c0_6] : memref<18x1xi32, #tpu.memory_space<vmem>>, vector<2x1xi32>
    %6 = tpu.iota {dimensions = array<i32: 1>} : vector<16x128xi32>
    %7 = vector.broadcast %4 : vector<16x1xi32> to vector<16x128xi32>
    %8 = arith.cmpi eq, %6, %7 : vector<16x128xi32>
    %9 = arith.extui %8 : vector<16x128xi1> to vector<16x128xi32>
    %10 = arith.sitofp %9 : vector<16x128xi32> to vector<16x128xf32>
    %cst = arith.constant dense<0.000000e+00> : vector<16x128xf32>
    %11 = tpu.matmul %10, %0, %cst {dimension_numbers = #tpu.dot_dimension_numbers<[1], [0], [0], [1], [0, 0, 1, 1], [], []>, precision = #tpu.contract_precision<fp32>} : vector<16x128xf32>, vector<128x128xf32>, vector<16x128xf32> -> vector<16x128xf32>
    %cst_7 = arith.constant 0.000000e+00 : f32
    %12 = vector.broadcast %cst_7 : f32 to vector<2x32xf32>
    %cst_8 = arith.constant 0.000000e+00 : f32
    %13 = vector.broadcast %cst_8 : f32 to vector<2x32xf32>
    %cst_9 = arith.constant 0.000000e+00 : f32
    %14 = vector.broadcast %cst_9 : f32 to vector<2x32xf32>
    %15 = vector.extract_strided_slice %11 {offsets = [0, 0], sizes = [2, 128], strides = [1, 1]} : vector<16x128xf32> to vector<2x128xf32>
    %cst_10 = arith.constant dense<0.000000e+00> : vector<2x128xf32>
    %16 = tpu.matmul %12, %1, %cst_10 {dimension_numbers = #tpu.dot_dimension_numbers<[1], [0], [0], [1], [0, 0, 1, 1], [], []>, precision = #tpu.contract_precision<fp32>} : vector<2x32xf32>, vector<32x128xf32>, vector<2x128xf32> -> vector<2x128xf32>
    %17 = arith.addf %15, %16 : vector<2x128xf32>
    %18 = vector.extract_strided_slice %17 {offsets = [0, 0], sizes = [2, 96], strides = [1, 1]} : vector<2x128xf32> to vector<2x96xf32>
    %19 = arith.negf %18 : vector<2x96xf32>
    %20 = math.exp %19 : vector<2x96xf32>
    %cst_11 = arith.constant 1.000000e+00 : f32
    %21 = vector.broadcast %cst_11 : f32 to vector<2x96xf32>
    %22 = arith.addf %21, %20 : vector<2x96xf32>
    %23 = arith.divf %21, %22 : vector<2x96xf32>
    %24 = vector.extract_strided_slice %17 {offsets = [0, 96], sizes = [2, 32], strides = [1, 1]} : vector<2x128xf32> to vector<2x32xf32>
    %25 = math.tanh %24 : vector<2x32xf32>
    %26 = vector.extract_strided_slice %23 {offsets = [0, 0], sizes = [2, 32], strides = [1, 1]} : vector<2x96xf32> to vector<2x32xf32>
    %27 = vector.extract_strided_slice %23 {offsets = [0, 32], sizes = [2, 32], strides = [1, 1]} : vector<2x96xf32> to vector<2x32xf32>
    %28 = vector.extract_strided_slice %23 {offsets = [0, 64], sizes = [2, 32], strides = [1, 1]} : vector<2x96xf32> to vector<2x32xf32>
    %29 = arith.mulf %27, %13 : vector<2x32xf32>
    %30 = arith.mulf %26, %25 : vector<2x32xf32>
    %31 = arith.addf %29, %30 : vector<2x32xf32>
    %32 = math.tanh %31 : vector<2x32xf32>
    %33 = arith.mulf %28, %32 : vector<2x32xf32>
    %c1_i32 = arith.constant 1 : i32
    %34 = vector.broadcast %c1_i32 : i32 to vector<2x1xi32>
    %35 = arith.cmpi eq, %5, %34 : vector<2x1xi32>
    %36 = vector.shape_cast %35 : vector<2x1xi1> to vector<2x1xi1>
    %37 = vector.broadcast %36 : vector<2x1xi1> to vector<2x32xi1>
    %38 = arith.select %37, %33, %14 : vector<2x32xi1>, vector<2x32xf32>
    %39 = vector.extract_strided_slice %11 {offsets = [2, 0], sizes = [2, 128], strides = [1, 1]} : vector<16x128xf32> to vector<2x128xf32>
    %cst_12 = arith.constant dense<0.000000e+00> : vector<2x128xf32>
    %40 = tpu.matmul %33, %1, %cst_12 {dimension_numbers = #tpu.dot_dimension_numbers<[1], [0], [0], [1], [0, 0, 1, 1], [], []>, precision = #tpu.contract_precision<fp32>} : vector<2x32xf32>, vector<32x128xf32>, vector<2x128xf32> -> vector<2x128xf32>
    %41 = arith.addf %39, %40 : vector<2x128xf32>
    %42 = vector.extract_strided_slice %41 {offsets = [0, 0], sizes = [2, 96], strides = [1, 1]} : vector<2x128xf32> to vector<2x96xf32>
    %43 = arith.negf %42 : vector<2x96xf32>
    %44 = math.exp %43 : vector<2x96xf32>
    %cst_13 = arith.constant 1.000000e+00 : f32
    %45 = vector.broadcast %cst_13 : f32 to vector<2x96xf32>
    %46 = arith.addf %45, %44 : vector<2x96xf32>
    %47 = arith.divf %45, %46 : vector<2x96xf32>
    %48 = vector.extract_strided_slice %41 {offsets = [0, 96], sizes = [2, 32], strides = [1, 1]} : vector<2x128xf32> to vector<2x32xf32>
    %49 = math.tanh %48 : vector<2x32xf32>
    %50 = vector.extract_strided_slice %47 {offsets = [0, 0], sizes = [2, 32], strides = [1, 1]} : vector<2x96xf32> to vector<2x32xf32>
    %51 = vector.extract_strided_slice %47 {offsets = [0, 32], sizes = [2, 32], strides = [1, 1]} : vector<2x96xf32> to vector<2x32xf32>
    %52 = vector.extract_strided_slice %47 {offsets = [0, 64], sizes = [2, 32], strides = [1, 1]} : vector<2x96xf32> to vector<2x32xf32>
    %53 = arith.mulf %51, %31 : vector<2x32xf32>
    %54 = arith.mulf %50, %49 : vector<2x32xf32>
    %55 = arith.addf %53, %54 : vector<2x32xf32>
    %56 = math.tanh %55 : vector<2x32xf32>
    %57 = arith.mulf %52, %56 : vector<2x32xf32>
    %c2_i32 = arith.constant 2 : i32
    %58 = vector.broadcast %c2_i32 : i32 to vector<2x1xi32>
    %59 = arith.cmpi eq, %5, %58 : vector<2x1xi32>
    %60 = vector.shape_cast %59 : vector<2x1xi1> to vector<2x1xi1>
    %61 = vector.broadcast %60 : vector<2x1xi1> to vector<2x32xi1>
    %62 = arith.select %61, %57, %38 : vector<2x32xi1>, vector<2x32xf32>
    %63 = vector.extract_strided_slice %11 {offsets = [4, 0], sizes = [2, 128], strides = [1, 1]} : vector<16x128xf32> to vector<2x128xf32>
    %cst_14 = arith.constant dense<0.000000e+00> : vector<2x128xf32>
    %64 = tpu.matmul %57, %1, %cst_14 {dimension_numbers = #tpu.dot_dimension_numbers<[1], [0], [0], [1], [0, 0, 1, 1], [], []>, precision = #tpu.contract_precision<fp32>} : vector<2x32xf32>, vector<32x128xf32>, vector<2x128xf32> -> vector<2x128xf32>
    %65 = arith.addf %63, %64 : vector<2x128xf32>
    %66 = vector.extract_strided_slice %65 {offsets = [0, 0], sizes = [2, 96], strides = [1, 1]} : vector<2x128xf32> to vector<2x96xf32>
    %67 = arith.negf %66 : vector<2x96xf32>
    %68 = math.exp %67 : vector<2x96xf32>
    %cst_15 = arith.constant 1.000000e+00 : f32
    %69 = vector.broadcast %cst_15 : f32 to vector<2x96xf32>
    %70 = arith.addf %69, %68 : vector<2x96xf32>
    %71 = arith.divf %69, %70 : vector<2x96xf32>
    %72 = vector.extract_strided_slice %65 {offsets = [0, 96], sizes = [2, 32], strides = [1, 1]} : vector<2x128xf32> to vector<2x32xf32>
    %73 = math.tanh %72 : vector<2x32xf32>
    %74 = vector.extract_strided_slice %71 {offsets = [0, 0], sizes = [2, 32], strides = [1, 1]} : vector<2x96xf32> to vector<2x32xf32>
    %75 = vector.extract_strided_slice %71 {offsets = [0, 32], sizes = [2, 32], strides = [1, 1]} : vector<2x96xf32> to vector<2x32xf32>
    %76 = vector.extract_strided_slice %71 {offsets = [0, 64], sizes = [2, 32], strides = [1, 1]} : vector<2x96xf32> to vector<2x32xf32>
    %77 = arith.mulf %75, %55 : vector<2x32xf32>
    %78 = arith.mulf %74, %73 : vector<2x32xf32>
    %79 = arith.addf %77, %78 : vector<2x32xf32>
    %80 = math.tanh %79 : vector<2x32xf32>
    %81 = arith.mulf %76, %80 : vector<2x32xf32>
    %c3_i32 = arith.constant 3 : i32
    %82 = vector.broadcast %c3_i32 : i32 to vector<2x1xi32>
    %83 = arith.cmpi eq, %5, %82 : vector<2x1xi32>
    %84 = vector.shape_cast %83 : vector<2x1xi1> to vector<2x1xi1>
    %85 = vector.broadcast %84 : vector<2x1xi1> to vector<2x32xi1>
    %86 = arith.select %85, %81, %62 : vector<2x32xi1>, vector<2x32xf32>
    %87 = vector.extract_strided_slice %11 {offsets = [6, 0], sizes = [2, 128], strides = [1, 1]} : vector<16x128xf32> to vector<2x128xf32>
    %cst_16 = arith.constant dense<0.000000e+00> : vector<2x128xf32>
    %88 = tpu.matmul %81, %1, %cst_16 {dimension_numbers = #tpu.dot_dimension_numbers<[1], [0], [0], [1], [0, 0, 1, 1], [], []>, precision = #tpu.contract_precision<fp32>} : vector<2x32xf32>, vector<32x128xf32>, vector<2x128xf32> -> vector<2x128xf32>
    %89 = arith.addf %87, %88 : vector<2x128xf32>
    %90 = vector.extract_strided_slice %89 {offsets = [0, 0], sizes = [2, 96], strides = [1, 1]} : vector<2x128xf32> to vector<2x96xf32>
    %91 = arith.negf %90 : vector<2x96xf32>
    %92 = math.exp %91 : vector<2x96xf32>
    %cst_17 = arith.constant 1.000000e+00 : f32
    %93 = vector.broadcast %cst_17 : f32 to vector<2x96xf32>
    %94 = arith.addf %93, %92 : vector<2x96xf32>
    %95 = arith.divf %93, %94 : vector<2x96xf32>
    %96 = vector.extract_strided_slice %89 {offsets = [0, 96], sizes = [2, 32], strides = [1, 1]} : vector<2x128xf32> to vector<2x32xf32>
    %97 = math.tanh %96 : vector<2x32xf32>
    %98 = vector.extract_strided_slice %95 {offsets = [0, 0], sizes = [2, 32], strides = [1, 1]} : vector<2x96xf32> to vector<2x32xf32>
    %99 = vector.extract_strided_slice %95 {offsets = [0, 32], sizes = [2, 32], strides = [1, 1]} : vector<2x96xf32> to vector<2x32xf32>
    %100 = vector.extract_strided_slice %95 {offsets = [0, 64], sizes = [2, 32], strides = [1, 1]} : vector<2x96xf32> to vector<2x32xf32>
    %101 = arith.mulf %99, %79 : vector<2x32xf32>
    %102 = arith.mulf %98, %97 : vector<2x32xf32>
    %103 = arith.addf %101, %102 : vector<2x32xf32>
    %104 = math.tanh %103 : vector<2x32xf32>
    %105 = arith.mulf %100, %104 : vector<2x32xf32>
    %c4_i32 = arith.constant 4 : i32
    %106 = vector.broadcast %c4_i32 : i32 to vector<2x1xi32>
    %107 = arith.cmpi eq, %5, %106 : vector<2x1xi32>
    %108 = vector.shape_cast %107 : vector<2x1xi1> to vector<2x1xi1>
    %109 = vector.broadcast %108 : vector<2x1xi1> to vector<2x32xi1>
    %110 = arith.select %109, %105, %86 : vector<2x32xi1>, vector<2x32xf32>
    %111 = vector.extract_strided_slice %11 {offsets = [8, 0], sizes = [2, 128], strides = [1, 1]} : vector<16x128xf32> to vector<2x128xf32>
    %cst_18 = arith.constant dense<0.000000e+00> : vector<2x128xf32>
    %112 = tpu.matmul %105, %1, %cst_18 {dimension_numbers = #tpu.dot_dimension_numbers<[1], [0], [0], [1], [0, 0, 1, 1], [], []>, precision = #tpu.contract_precision<fp32>} : vector<2x32xf32>, vector<32x128xf32>, vector<2x128xf32> -> vector<2x128xf32>
    %113 = arith.addf %111, %112 : vector<2x128xf32>
    %114 = vector.extract_strided_slice %113 {offsets = [0, 0], sizes = [2, 96], strides = [1, 1]} : vector<2x128xf32> to vector<2x96xf32>
    %115 = arith.negf %114 : vector<2x96xf32>
    %116 = math.exp %115 : vector<2x96xf32>
    %cst_19 = arith.constant 1.000000e+00 : f32
    %117 = vector.broadcast %cst_19 : f32 to vector<2x96xf32>
    %118 = arith.addf %117, %116 : vector<2x96xf32>
    %119 = arith.divf %117, %118 : vector<2x96xf32>
    %120 = vector.extract_strided_slice %113 {offsets = [0, 96], sizes = [2, 32], strides = [1, 1]} : vector<2x128xf32> to vector<2x32xf32>
    %121 = math.tanh %120 : vector<2x32xf32>
    %122 = vector.extract_strided_slice %119 {offsets = [0, 0], sizes = [2, 32], strides = [1, 1]} : vector<2x96xf32> to vector<2x32xf32>
    %123 = vector.extract_strided_slice %119 {offsets = [0, 32], sizes = [2, 32], strides = [1, 1]} : vector<2x96xf32> to vector<2x32xf32>
    %124 = vector.extract_strided_slice %119 {offsets = [0, 64], sizes = [2, 32], strides = [1, 1]} : vector<2x96xf32> to vector<2x32xf32>
    %125 = arith.mulf %123, %103 : vector<2x32xf32>
    %126 = arith.mulf %122, %121 : vector<2x32xf32>
    %127 = arith.addf %125, %126 : vector<2x32xf32>
    %128 = math.tanh %127 : vector<2x32xf32>
    %129 = arith.mulf %124, %128 : vector<2x32xf32>
    %c5_i32 = arith.constant 5 : i32
    %130 = vector.broadcast %c5_i32 : i32 to vector<2x1xi32>
    %131 = arith.cmpi eq, %5, %130 : vector<2x1xi32>
    %132 = vector.shape_cast %131 : vector<2x1xi1> to vector<2x1xi1>
    %133 = vector.broadcast %132 : vector<2x1xi1> to vector<2x32xi1>
    %134 = arith.select %133, %129, %110 : vector<2x32xi1>, vector<2x32xf32>
    %135 = vector.extract_strided_slice %11 {offsets = [10, 0], sizes = [2, 128], strides = [1, 1]} : vector<16x128xf32> to vector<2x128xf32>
    %cst_20 = arith.constant dense<0.000000e+00> : vector<2x128xf32>
    %136 = tpu.matmul %129, %1, %cst_20 {dimension_numbers = #tpu.dot_dimension_numbers<[1], [0], [0], [1], [0, 0, 1, 1], [], []>, precision = #tpu.contract_precision<fp32>} : vector<2x32xf32>, vector<32x128xf32>, vector<2x128xf32> -> vector<2x128xf32>
    %137 = arith.addf %135, %136 : vector<2x128xf32>
    %138 = vector.extract_strided_slice %137 {offsets = [0, 0], sizes = [2, 96], strides = [1, 1]} : vector<2x128xf32> to vector<2x96xf32>
    %139 = arith.negf %138 : vector<2x96xf32>
    %140 = math.exp %139 : vector<2x96xf32>
    %cst_21 = arith.constant 1.000000e+00 : f32
    %141 = vector.broadcast %cst_21 : f32 to vector<2x96xf32>
    %142 = arith.addf %141, %140 : vector<2x96xf32>
    %143 = arith.divf %141, %142 : vector<2x96xf32>
    %144 = vector.extract_strided_slice %137 {offsets = [0, 96], sizes = [2, 32], strides = [1, 1]} : vector<2x128xf32> to vector<2x32xf32>
    %145 = math.tanh %144 : vector<2x32xf32>
    %146 = vector.extract_strided_slice %143 {offsets = [0, 0], sizes = [2, 32], strides = [1, 1]} : vector<2x96xf32> to vector<2x32xf32>
    %147 = vector.extract_strided_slice %143 {offsets = [0, 32], sizes = [2, 32], strides = [1, 1]} : vector<2x96xf32> to vector<2x32xf32>
    %148 = vector.extract_strided_slice %143 {offsets = [0, 64], sizes = [2, 32], strides = [1, 1]} : vector<2x96xf32> to vector<2x32xf32>
    %149 = arith.mulf %147, %127 : vector<2x32xf32>
    %150 = arith.mulf %146, %145 : vector<2x32xf32>
    %151 = arith.addf %149, %150 : vector<2x32xf32>
    %152 = math.tanh %151 : vector<2x32xf32>
    %153 = arith.mulf %148, %152 : vector<2x32xf32>
    %c6_i32 = arith.constant 6 : i32
    %154 = vector.broadcast %c6_i32 : i32 to vector<2x1xi32>
    %155 = arith.cmpi eq, %5, %154 : vector<2x1xi32>
    %156 = vector.shape_cast %155 : vector<2x1xi1> to vector<2x1xi1>
    %157 = vector.broadcast %156 : vector<2x1xi1> to vector<2x32xi1>
    %158 = arith.select %157, %153, %134 : vector<2x32xi1>, vector<2x32xf32>
    %159 = vector.extract_strided_slice %11 {offsets = [12, 0], sizes = [2, 128], strides = [1, 1]} : vector<16x128xf32> to vector<2x128xf32>
    %cst_22 = arith.constant dense<0.000000e+00> : vector<2x128xf32>
    %160 = tpu.matmul %153, %1, %cst_22 {dimension_numbers = #tpu.dot_dimension_numbers<[1], [0], [0], [1], [0, 0, 1, 1], [], []>, precision = #tpu.contract_precision<fp32>} : vector<2x32xf32>, vector<32x128xf32>, vector<2x128xf32> -> vector<2x128xf32>
    %161 = arith.addf %159, %160 : vector<2x128xf32>
    %162 = vector.extract_strided_slice %161 {offsets = [0, 0], sizes = [2, 96], strides = [1, 1]} : vector<2x128xf32> to vector<2x96xf32>
    %163 = arith.negf %162 : vector<2x96xf32>
    %164 = math.exp %163 : vector<2x96xf32>
    %cst_23 = arith.constant 1.000000e+00 : f32
    %165 = vector.broadcast %cst_23 : f32 to vector<2x96xf32>
    %166 = arith.addf %165, %164 : vector<2x96xf32>
    %167 = arith.divf %165, %166 : vector<2x96xf32>
    %168 = vector.extract_strided_slice %161 {offsets = [0, 96], sizes = [2, 32], strides = [1, 1]} : vector<2x128xf32> to vector<2x32xf32>
    %169 = math.tanh %168 : vector<2x32xf32>
    %170 = vector.extract_strided_slice %167 {offsets = [0, 0], sizes = [2, 32], strides = [1, 1]} : vector<2x96xf32> to vector<2x32xf32>
    %171 = vector.extract_strided_slice %167 {offsets = [0, 32], sizes = [2, 32], strides = [1, 1]} : vector<2x96xf32> to vector<2x32xf32>
    %172 = vector.extract_strided_slice %167 {offsets = [0, 64], sizes = [2, 32], strides = [1, 1]} : vector<2x96xf32> to vector<2x32xf32>
    %173 = arith.mulf %171, %151 : vector<2x32xf32>
    %174 = arith.mulf %170, %169 : vector<2x32xf32>
    %175 = arith.addf %173, %174 : vector<2x32xf32>
    %176 = math.tanh %175 : vector<2x32xf32>
    %177 = arith.mulf %172, %176 : vector<2x32xf32>
    %c7_i32 = arith.constant 7 : i32
    %178 = vector.broadcast %c7_i32 : i32 to vector<2x1xi32>
    %179 = arith.cmpi eq, %5, %178 : vector<2x1xi32>
    %180 = vector.shape_cast %179 : vector<2x1xi1> to vector<2x1xi1>
    %181 = vector.broadcast %180 : vector<2x1xi1> to vector<2x32xi1>
    %182 = arith.select %181, %177, %158 : vector<2x32xi1>, vector<2x32xf32>
    %183 = vector.extract_strided_slice %11 {offsets = [14, 0], sizes = [2, 128], strides = [1, 1]} : vector<16x128xf32> to vector<2x128xf32>
    %cst_24 = arith.constant dense<0.000000e+00> : vector<2x128xf32>
    %184 = tpu.matmul %177, %1, %cst_24 {dimension_numbers = #tpu.dot_dimension_numbers<[1], [0], [0], [1], [0, 0, 1, 1], [], []>, precision = #tpu.contract_precision<fp32>} : vector<2x32xf32>, vector<32x128xf32>, vector<2x128xf32> -> vector<2x128xf32>
    %185 = arith.addf %183, %184 : vector<2x128xf32>
    %186 = vector.extract_strided_slice %185 {offsets = [0, 0], sizes = [2, 96], strides = [1, 1]} : vector<2x128xf32> to vector<2x96xf32>
    %187 = arith.negf %186 : vector<2x96xf32>
    %188 = math.exp %187 : vector<2x96xf32>
    %cst_25 = arith.constant 1.000000e+00 : f32
    %189 = vector.broadcast %cst_25 : f32 to vector<2x96xf32>
    %190 = arith.addf %189, %188 : vector<2x96xf32>
    %191 = arith.divf %189, %190 : vector<2x96xf32>
    %192 = vector.extract_strided_slice %185 {offsets = [0, 96], sizes = [2, 32], strides = [1, 1]} : vector<2x128xf32> to vector<2x32xf32>
    %193 = math.tanh %192 : vector<2x32xf32>
    %194 = vector.extract_strided_slice %191 {offsets = [0, 0], sizes = [2, 32], strides = [1, 1]} : vector<2x96xf32> to vector<2x32xf32>
    %195 = vector.extract_strided_slice %191 {offsets = [0, 32], sizes = [2, 32], strides = [1, 1]} : vector<2x96xf32> to vector<2x32xf32>
    %196 = vector.extract_strided_slice %191 {offsets = [0, 64], sizes = [2, 32], strides = [1, 1]} : vector<2x96xf32> to vector<2x32xf32>
    %197 = arith.mulf %195, %175 : vector<2x32xf32>
    %198 = arith.mulf %194, %193 : vector<2x32xf32>
    %199 = arith.addf %197, %198 : vector<2x32xf32>
    %200 = math.tanh %199 : vector<2x32xf32>
    %201 = arith.mulf %196, %200 : vector<2x32xf32>
    %c8_i32 = arith.constant 8 : i32
    %202 = vector.broadcast %c8_i32 : i32 to vector<2x1xi32>
    %203 = arith.cmpi eq, %5, %202 : vector<2x1xi32>
    %204 = vector.shape_cast %203 : vector<2x1xi1> to vector<2x1xi1>
    %205 = vector.broadcast %204 : vector<2x1xi1> to vector<2x32xi1>
    %206 = arith.select %205, %201, %182 : vector<2x32xi1>, vector<2x32xf32>
    %cst_26 = arith.constant dense<0.000000e+00> : vector<2x128xf32>
    %207 = tpu.matmul %206, %2, %cst_26 {dimension_numbers = #tpu.dot_dimension_numbers<[1], [0], [0], [1], [0, 0, 1, 1], [], []>, precision = #tpu.contract_precision<fp32>} : vector<2x32xf32>, vector<32x128xf32>, vector<2x128xf32> -> vector<2x128xf32>
    %208 = vector.broadcast %3 : vector<1x128xf32> to vector<2x128xf32>
    %209 = arith.addf %207, %208 : vector<2x128xf32>
    %c0_27 = arith.constant 0 : index
    %c0_28 = arith.constant 0 : index
    %210 = vector.load %arg2[%c0_27, %c0_28] : memref<2x128xf32, #tpu.memory_space<vmem>>, vector<2x128xf32>
    tpu.vector_store %arg2[%c0_27, %c0_28], %209 {strides = array<i32>} : memref<2x128xf32, #tpu.memory_space<vmem>>, vector<2x128xf32>,
    return
  }
}

</mosaic_0001>

<bundles_post_ra>
// kernel: run_testlstm.1
= control target key start
LH: loop header
LB: loop body
LE: loop exit
PB: predicated region body
PF: predicated region fallthrough
CT: control target
= control target key end

     0   :  { %7 = vsyncpa [#allocation3], 0  ;;  %s8284_s0 = inlined_call_operand.vmem [shape: s32[18,1], index: 0, kind: input, shape index: {}]   ;;  %s8285_s1 = inlined_call_operand.hbm [shape: f32[200,128], index: 1, kind: input, shape index: {}]   ;;  %s8286_s2 = inlined_call_operand.hbm [shape: f32[2,128], index: 2, kind: output, shape index: {}]  }
   0x1   :  { %8 = vsyncpa [#allocation4], 0  ;;  %s7422_s9 = smov [#allocation2]   ;;  %s7374_s13 = scalar_lea.hbm %s8285_s1, 3200 }
   0x2   :  { %s16_s10 = sshll.u32 %s7422_s9, 4  ;;  %p7375_p0 = scmp.ne.s32.totalorder %s8285_s1, %s7374_s13  ;;  %s17_s10 = int_to_ptr.vmem [resolvable:$true] %s16_s10 }
   0x3   :  { %p7378_p1 = scmp.lt.u32.totalorder %s7374_s13, %s8285_s1 }
   0x5   :  { %p7380_p2 = pnand %p7378_p1, %p7375_p0 }
   0x7   :  { %7383 = shalt.err (!%p7380_p2)
}
   0x8   :  { %s7384_s18 = scalar_lea.vmem %s17_s10, 3200  ;;  %p7389_p4 = scmp.lt.s32.totalorder %s17_s10, %s17_s10 }
   0x9   :  { %p7385_p3 = scmp.ne.s32.totalorder %s17_s10, %s7384_s18  ;;  %p7390_p5 = scmp.lt.s32.totalorder %s7384_s18, %s7384_s18 }
   0xb   :  { %p7391_p6 = por %p7390_p5, %p7389_p4 }
   0xd   :  { %p7392_p7 = pnand %p7391_p6, %p7385_p3 }
   0xf   :  { %7395 = shalt.err (!%p7392_p7)
}
  0x10   :  { %s7423_s19 = smov 128   ;;  %s7424_s20 = smov 8  }
  0x11   :  { %22 = dma.hbm_to_vmem [thread:$0]  %s8285_s1, 3200, %s17_s10, [#allocation3], %s7423_s19, %s7423_s19, %s7424_s20  }
  0x12   :  { %7418 = dma.done.wait [#allocation3], 3200  }
  0x13   :  { %7419 = vsyncadd [#allocation3], 4294964096  ;;  %v8287_v0 = vmov 0   ;;  %v51_v1 = vld [vmem:[%s8284_s0] sm:$0xff]  ;;  %v27_v3 = vld [vmem:[#allocation2 + $0x8] sm:$0xff]  ;;  %vm7427_vm0 = vmmov 0  }
  0x14   :  { %7308 = vset.pattern.permute.xlu0 %v8287_v0  ;;  %7309 = vset.pattern.permute.xlu1 %v8287_v0  ;;  %v26_v2 = vld [vmem:[#allocation2] sm:$0xff]  ;;  %v28_v5 = vld [vmem:[#allocation2 + $0x10] sm:$0xff]  ;;  %v29_v6 = vld [vmem:[#allocation2 + $0x18] sm:$0xff]  ;;  %v72_v8 = vand.u32 4294901760, %v27_v3  ;;  %s7430_s1 = smov 32   ;;  %s7431_s27 = smov 64  }
  0x15   :  { %57 = vperm.xlu0 %7308, %v51_v1   ;;  %v69_v4 = vand.u32 4294901760, %v26_v2  ;;  %v52_v7 = vld [vmem:[%s8284_s0 + $0x8] sm:$0xff]  ;;  %v75_v9 = vand.u32 4294901760, %v28_v5  ;;  %v78_v10 = vand.u32 4294901760, %v29_v6  ;;  %v30_v11 = vld [vmem:[#allocation2 + $0x20] sm:$0xff]  ;;  %v32_v17 = vld [vmem:[#allocation2 + $0x30] sm:$0xff] }
  0x16   :  { %v31_v12 = vld [vmem:[#allocation2 + $0x28] sm:$0xff]  ;;  %v81_v15 = vand.u32 4294901760, %v30_v11  ;;  %v33_v18 = vld [vmem:[#allocation2 + $0x38] sm:$0xff]  ;;  %v87_v20 = vand.u32 4294901760, %v32_v17  ;;  %v34_v22 = vld [vmem:[#allocation2 + $0x40] sm:$0xff]  ;;  %v7504_v46 = vsub.f32 %v27_v3, %v72_v8  ;;  %vm752_vm3 = vcmask 261120  }
  0x17   :  { %v7468_v13 = vpack.c.bf16 %v72_v8, %v69_v4  ;;  %v7470_v14 = vpack.c.bf16 %v78_v10, %v75_v9  ;;  %v84_v16 = vand.u32 4294901760, %v31_v12  ;;  %v90_v21 = vand.u32 4294901760, %v33_v18  ;;  %v35_v23 = vld [vmem:[#allocation2 + $0x48] sm:$0xff]  ;;  %v36_v26 = vld [vmem:[#allocation2 + $0x50] sm:$0xff]  ;;  %v37_v32 = vld [vmem:[#allocation2 + $0x58] sm:$0xff] }
  0x18   :  { %v7477_v24 = vsub.f32 %v28_v5, %v75_v9  ;;  %v7479_v25 = vsub.f32 %v29_v6, %v78_v10  ;;  %v93_v30 = vand.u32 4294901760, %v34_v22  ;;  %v96_v31 = vand.u32 4294901760, %v35_v23  ;;  %v38_v39 = vld [vmem:[#allocation2 + $0x60] sm:$0xff]  ;;  %v39_v44 = vld [vmem:[#allocation2 + $0x68] sm:$0xff]  ;;  %v40_v55 = vld [vmem:[#allocation2 + $0x70] sm:$0xff] }
  0x19   :  { %60 = vperm.xlu0 %7308, %v52_v7   ;;  %6701 = vmatprep.subr.bf16.mxu0 %v7468_v13  ;;  %v7475_v19 = vpack.c.bf16 %v84_v16, %v81_v15  ;;  %v7485_v29 = vpack.c.bf16 %v90_v21, %v87_v20  ;;  %v7493_v35 = vsub.f32 %v30_v11, %v81_v15  ;;  %v99_v36 = vand.u32 4294901760, %v36_v26  ;;  %v41_v63 = vld [vmem:[#allocation2 + $0x78] sm:$0xff] }
  0x1a   :  { %6703 = vmatpush3.bf16.msra.mxu0 %v7468_v13  ;;  %v8302_v27 = vand.u32 4294901760, %v7477_v24  ;;  %v8301_v28 = vand.u32 4294901760, %v7479_v25  ;;  %v7495_v37 = vsub.f32 %v31_v12, %v84_v16  ;;  %v102_v38 = vand.u32 4294901760, %v37_v32 }
  0x1b   :  { %6705 = vmatprep.subr.bf16.mxu0 %v7470_v14  ;;  %v8300_v42 = vand.u32 4294901760, %v7493_v35  ;;  %v7500_v43 = vpack.c.bf16 %v96_v31, %v93_v30  ;;  %v7502_v45 = vsub.f32 %v26_v2, %v69_v4  ;;  %v7512_v50 = vsub.f32 %v32_v17, %v87_v20 }
  0x1c   :  { %v187_v33 = vsub.f32 %v7477_v24, %v8302_v27  ;;  %v194_v34 = vsub.f32 %v7479_v25, %v8301_v28  ;;  %v8299_v47 = vand.u32 4294901760, %v7495_v37  ;;  %v7514_v51 = vsub.f32 %v33_v18, %v90_v21 }
  0x1d   :  { %v201_v49 = vsub.f32 %v7493_v35, %v8300_v42  ;;  %v105_v52 = vand.u32 4294901760, %v38_v39  ;;  %v108_v54 = vand.u32 4294901760, %v39_v44  ;;  %v8298_v57 = vand.u32 4294901760, %v7512_v50 }
  0x1e   :  { %6707 = vmatpush3.bf16.msra.mxu0 %v7470_v14  ;;  %v188_v40 = vand.u32 4294901760, %v187_v33  ;;  %v195_v41 = vand.u32 4294901760, %v194_v34  ;;  %v208_v53 = vsub.f32 %v7495_v37, %v8299_v47  ;;  %v8297_v58 = vand.u32 4294901760, %v7514_v51 }
  0x1f   :  { %6709 = vmatprep.subr.bf16.mxu0 %v7475_v19  ;;  %v202_v56 = vand.u32 4294901760, %v201_v49  ;;  %v7523_v59 = vpack.c.bf16 %v102_v38, %v99_v36  ;;  %v172_v60 = vand.u32 4294901760, %v7502_v45  ;;  %v179_v61 = vand.u32 4294901760, %v7504_v46 }
  0x20   :  { %v7507_v48 = vpack.c.bf16 %v195_v41, %v188_v40  ;;  %v209_v62 = vand.u32 4294901760, %v208_v53  ;;  %v215_v1 = vsub.f32 %v7512_v50, %v8298_v57  ;;  %v222_v2 = vsub.f32 %v7514_v51, %v8297_v58 }
  0x21   :  { %v7533_v3 = vsub.f32 %v34_v22, %v93_v30  ;;  %v7535_v4 = vsub.f32 %v35_v23, %v96_v31  ;;  %v111_v5 = vand.u32 4294901760, %v40_v55  ;;  %v7543_v11 = vpack.c.bf16 %v108_v54, %v105_v52 }
  0x22   :  { %6711 = vmatpush3.bf16.msra.mxu0 %v7475_v19  ;;  %v7537_v6 = vpack.c.bf16 %v209_v62, %v202_v56  ;;  %v216_v7 = vand.u32 4294901760, %v215_v1  ;;  %v223_v8 = vand.u32 4294901760, %v222_v2  ;;  %v114_v12 = vand.u32 4294901760, %v41_v63 }
  0x23   :  { %6713 = vmatprep.subr.bf16.mxu0 %v7485_v29  ;;  %v8296_v9 = vand.u32 4294901760, %v7533_v3  ;;  %v8295_v10 = vand.u32 4294901760, %v7535_v4  ;;  %v173_v15 = vsub.f32 %v7502_v45, %v172_v60  ;;  %v180_v16 = vsub.f32 %v7504_v46, %v179_v61 }
  0x24   :  { %v7551_v17 = vpack.c.bf16 %v223_v8, %v216_v7  ;;  %v7559_v21 = vsub.f32 %v36_v26, %v99_v36  ;;  %v7561_v22 = vsub.f32 %v37_v32, %v102_v38  ;;  %v7566_v33 = vpack.c.bf16 %v114_v12, %v111_v5 }
  0x25   :  { %v229_v18 = vsub.f32 %v7533_v3, %v8296_v9  ;;  %v236_v20 = vsub.f32 %v7535_v4, %v8295_v10  ;;  %v174_v34 = vand.u32 4294901760, %v173_v15  ;;  %v181_v40 = vand.u32 4294901760, %v180_v16 }
  0x26   :  { %6715 = vmatpush3.bf16.msra.mxu0 %v7485_v29  ;;  %v8294_v31 = vand.u32 4294901760, %v7559_v21  ;;  %v8293_v41 = vand.u32 4294901760, %v7561_v22  ;;  %v7574_v32 = vsub.f32 %v38_v39, %v105_v52  ;;  %v7576_v36 = vsub.f32 %v39_v44, %v108_v54 }
  0x27   :  { %6717 = vmatprep.subr.bf16.mxu0 %v7500_v43  ;;  %v230_v23 = vand.u32 4294901760, %v229_v18  ;;  %v237_v30 = vand.u32 4294901760, %v236_v20  ;;  %v7585_v1 = vpack.c.bf16 %v181_v40, %v174_v34  ;;  %v7593_v52 = vsub.f32 %v40_v55, %v111_v5 }
  0x28   :  { %v243_v26 = vsub.f32 %v7559_v21, %v8294_v31  ;;  %v250_v38 = vsub.f32 %v7561_v22, %v8293_v41  ;;  %v8292_v56 = vand.u32 4294901760, %v7574_v32  ;;  %v8291_v62 = vand.u32 4294901760, %v7576_v36 }
  0x29   :  { %v7569_v49 = vpack.c.bf16 %v237_v30, %v230_v23  ;;  %v7595_v54 = vsub.f32 %v41_v63, %v114_v12  ;;  %v8290_v16 = vand.u32 4294901760, %v7593_v52  ;;  %v7615_v30 = vpack.c.bf16 %v7504_v46, %v7502_v45 }
  0x2a   :  { %6719 = vmatpush3.bf16.msra.mxu0 %v7500_v43  ;;  %v244_v53 = vand.u32 4294901760, %v243_v26  ;;  %v251_v2 = vand.u32 4294901760, %v250_v38  ;;  %v257_v39 = vsub.f32 %v7574_v32, %v8292_v56  ;;  %v264_v44 = vsub.f32 %v7576_v36, %v8291_v62 }
  0x2b   :  { %6721 = vmatprep.subr.bf16.mxu0 %v7523_v59  ;;  %v8289_v18 = vand.u32 4294901760, %v7595_v54  ;;  %v271_v55 = vsub.f32 %v7593_v52, %v8290_v16  ;;  %v7619_v34 = vpack.c.bf16 %v7479_v25, %v7477_v24  ;;  %v7623_v40 = vpack.c.bf16 %v7495_v37, %v7493_v35  ;;  %v45_v16 = vld [vmem:[#allocation2 + $0x98] sm:$0xff] }
  0x2c   :  { %v7597_v7 = vpack.c.bf16 %v251_v2, %v244_v53  ;;  %v258_v8 = vand.u32 4294901760, %v257_v39  ;;  %v265_v15 = vand.u32 4294901760, %v264_v44  ;;  %v7627_v26 = vpack.c.bf16 %v7514_v51, %v7512_v50  ;;  %v42_v44 = vld [vmem:[#allocation2 + $0x80] sm:$0xff] }
  0x2d   :  { %v278_v63 = vsub.f32 %v7595_v54, %v8289_v18  ;;  %v272_v5 = vand.u32 4294901760, %v271_v55  ;;  %v7631_v38 = vpack.c.bf16 %v7535_v4, %v7533_v3  ;;  %v7635_v53 = vpack.c.bf16 %v7561_v22, %v7559_v21  ;;  %v44_v18 = vld [vmem:[#allocation2 + $0x90] sm:$0xff] }
  0x2e   :  { %6723 = vmatpush3.bf16.msra.mxu0 %v7523_v59  ;;  %v7603_v20 = vpack.c.bf16 %v265_v15, %v258_v8  ;;  %v7639_v2 = vpack.c.bf16 %v7576_v36, %v7574_v32  ;;  %v7643_v39 = vpack.c.bf16 %v7595_v54, %v7593_v52  ;;  %v43_v8 = vld [vmem:[#allocation2 + $0x88] sm:$0xff]  ;;  %v757_v15 = vand.u32 4294901760, %v42_v44 }
  0x2f   :  { %6725 = vmatprep.subr.bf16.mxu0 %v7543_v11  ;;  %v279_v12 = vand.u32 4294901760, %v278_v63  ;;  %v760_v55 = vand.u32 4294901760, %v43_v8  ;;  %v7426_v63 = vmov 0.0|0.0   ;;  %v763_v62 = vand.u32 4294901760, %v44_v18 }
  0x30   :  { %6892 = vmatprep.subr.bf16.mxu1 %v7426_v63  ;;  %v766_v56 = vand.u32 4294901760, %v45_v16  ;;  %v7428_v42 = vmov 0.0   ;;  %v8305_v45 = vand.u32 4294901760, %v7493_v35  ;;  %v8306_v46 = vand.u32 4294901760, %v7495_v37 }
  0x31   :  { %v7611_v23 = vpack.c.bf16 %v279_v12, %v272_v5  ;;  %v7646_v5 = vpack.c.bf16 %v760_v55, %v757_v15  ;;  %v837_v12 = vsub.f32 %v42_v44, %v757_v15  ;;  %v844_v0 = vsub.f32 %v43_v8, %v760_v55  ;;  %6114 = vmatprep.mubr.msk.f32.mxu1 %vm7427_vm0, %v7428_v42 }
  0x32   :  { %6727 = vmatpush3.bf16.msra.mxu0 %v7543_v11  ;;  %v7650_v10 = vpack.c.bf16 %v766_v56, %v763_v62  ;;  %v851_v57 = vsub.f32 %v44_v18, %v763_v62  ;;  %v858_v47 = vsub.f32 %v45_v16, %v766_v56  ;;  %v54_v18 = vlaneseq }
  0x33   :  { %6729 = vmatprep.subr.bf16.mxu0 %v7566_v33  ;;  %6894 = vmatpush3.bf16.msra.mxu1 %v7646_v5  ;;  %v838_v41 = vand.u32 4294901760, %v837_v12  ;;  %v845_v31 = vand.u32 4294901760, %v844_v0  ;;  %v7667_v16 = vpack.c.bf16 %v844_v0, %v837_v12  ;;  %v8311_v35 = vand.u32 4294901760, %v7559_v21 }
  0x34   :  { %6895 = vmatprep.subr.bf16.mxu1 %v7426_v63  ;;  %v852_v15 = vand.u32 4294901760, %v851_v57  ;;  %v859_v55 = vand.u32 4294901760, %v858_v47  ;;  %v8312_v37 = vand.u32 4294901760, %v7561_v22 }
  0x35   :  { %v839_v9 = vsub.f32 %v837_v12, %v838_v41  ;;  %v846_v58 = vsub.f32 %v844_v0, %v845_v31  ;;  %v7683_v0 = vand.u32 127, %v54_v18 }
  0x36   :  { %6731 = vmatpush3.bf16.msra.mxu0 %v7566_v33  ;;  %v853_v27 = vsub.f32 %v851_v57, %v852_v15  ;;  %v860_v62 = vsub.f32 %v858_v47, %v859_v55 }
  0x37   :  { %6733 = vmatprep.subr.bf16.mxu0 %v7585_v1  ;;  %6897 = vmatpush3.bf16.msra.mxu1 %v7650_v10  ;;  %v840_v44 = vand.u32 4294901760, %v839_v9  ;;  %v847_v8 = vand.u32 4294901760, %v846_v58 }
  0x38   :  { %6898 = vmatprep.subr.bf16.mxu1 %v7426_v63  ;;  %v854_v56 = vand.u32 4294901760, %v853_v27  ;;  %v861_v58 = vand.u32 4294901760, %v860_v62  ;;  %v7674_v27 = vpack.c.bf16 %v858_v47, %v851_v57  ;;  %v7687_v47 = vpack.c.bf16 %v845_v31, %v838_v41 }
  0x39   :  { %v7656_v28 = vpack.c.bf16 %v847_v8, %v840_v44  ;;  %v7702_v31 = vpack.c.bf16 %v859_v55, %v852_v15 }
  0x3a   :  { %6115 = vmatmul.mubr.f32.vlgmr.msra.gmra.mrb[0].mxu1 %v7428_v42  ;;  %v7663_v9 = vpack.c.bf16 %v861_v58, %v854_v56 }
  0x3b   :  { %6900 = vmatpush3.bf16.msra.mxu1 %v7656_v28  ;;  %6125 = vmatprep.mubr.msk.f32.mxu1 %vm7427_vm0, %v7428_v42 }
  0x3c   :  { %6901 = vmatprep.subr.bf16.mxu1 %v7426_v63 }
  0x3f   :  { %6903 = vmatpush3.bf16.msra.mxu1 %v7663_v9 }
  0x40   :  { %6904 = vmatprep.subr.bf16.mxu1 %v7426_v63 }
  0x42   :  { %6126 = vmatmul.mubr.f32.vlgmr.msra.gmra.mrb[2].mxu1 %v7428_v42 }
  0x43   :  { %6906 = vmatpush3.bf16.msra.mxu1 %v7667_v16  ;;  %6136 = vmatprep.mubr.msk.f32.mxu1 %vm7427_vm0, %v7428_v42 }
  0x44   :  { %6907 = vmatprep.subr.bf16.mxu1 %v7426_v63 }
  0x47   :  { %6909 = vmatpush3.bf16.msra.mxu1 %v7674_v27 }
  0x48   :  { %6910 = vmatprep.subr.bf16.mxu1 %v7426_v63 }
  0x4a   :  { %6137 = vmatmul.mubr.f32.vlgmr.msra.gmra.mrb[4].mxu1 %v7428_v42 }
  0x4b   :  { %6912 = vmatpush3.bf16.msra.mxu1 %v7646_v5  ;;  %6147 = vmatprep.mubr.msk.f32.mxu1 %vm7427_vm0, %v7428_v42 }
  0x4c   :  { %6913 = vmatprep.subr.bf16.mxu1 %v7426_v63 }
  0x4f   :  { %6915 = vmatpush3.bf16.msra.mxu1 %v7650_v10 }
  0x50   :  { %6916 = vmatprep.subr.bf16.mxu1 %v7426_v63 }
  0x52   :  { %6148 = vmatmul.mubr.f32.vlgmr.msra.gmra.mrb[6].mxu1 %v7428_v42 }
  0x53   :  { %6918 = vmatpush3.bf16.msra.mxu1 %v7687_v47  ;;  %6158 = vmatprep.mubr.msk.f32.mxu1 %vm7427_vm0, %v7428_v42 }
  0x54   :  { %6919 = vmatprep.subr.bf16.mxu1 %v7426_v63 }
  0x57   :  { %6921 = vmatpush3.bf16.msra.mxu1 %v7702_v31 }
  0x58   :  { %6922 = vmatprep.subr.bf16.mxu1 %v7426_v63 }
  0x5a   :  { %6159 = vmatmul.mubr.f32.vlgmr.msra.gmra.mrb[8].mxu1 %v7428_v42 }
  0x5b   :  { %6924 = vmatpush3.bf16.msra.mxu1 %v7646_v5  ;;  %6169 = vmatprep.mubr.msk.f32.mxu1 %vm7427_vm0, %v7428_v42 }
  0x5c   :  { %6925 = vmatprep.subr.bf16.mxu1 %v7426_v63 }
  0x5f   :  { %6927 = vmatpush3.bf16.msra.mxu1 %v7650_v10 }
  0x60   :  { %6928 = vmatprep.subr.bf16.mxu1 %v7426_v63 }
  0x62   :  { %6170 = vmatmul.mubr.f32.vlgmr.msra.gmra.mrb[10].mxu1 %v7428_v42 }
  0x63   :  { %6930 = vmatpush3.bf16.msra.mxu1 %v7646_v5  ;;  %6180 = vmatprep.mubr.msk.f32.mxu1 %vm7427_vm0, %v7428_v42 }
  0x64   :  { %6931 = vmatprep.subr.bf16.mxu1 %v7426_v63 }
  0x67   :  { %6933 = vmatpush3.bf16.msra.mxu1 %v7650_v10 }
  0x68   :  { %6934 = vmatprep.subr.bf16.mxu1 %v7426_v63 }
  0x94   :  { %v7689_v57 = vpop.permute.xlu0 %57 }
  0x95   :  { %vm62_vm1 = vcmp.eq.s32.totalorder %v7683_v0, %v7689_v57 }
  0x96   :  { %v5501_v12 = vsel %vm62_vm1, 1.0, %v7428_v42 }
  0x97   :  { %v7704_v41 = vsub.f32 %v5501_v12, %v5501_v12 }
  0x98   :  { %v7706_v44 = vpop.permute.xlu0 %60 }
  0x99   :  { %vm63_vm2 = vcmp.eq.s32.totalorder %v7683_v0, %v7706_v44  ;;  %v151_v8 = vand.u32 4294901760, %v7704_v41 }
  0x9a   :  { %v5502_v62 = vsel %vm63_vm2, 1.0, %v7428_v42 }
  0x9b   :  { %v7717_v15 = vsub.f32 %v5502_v62, %v5502_v62  ;;  %v152_v55 = vsub.f32 %v7704_v41, %v151_v8  ;;  %v7429_v62 = vmov 1.0  }
  0x9d   :  { %v153_v56 = vand.u32 4294901760, %v152_v55  ;;  %v161_v58 = vand.u32 4294901760, %v7717_v15 }
  0x9f   :  { %5928 = vmatprep.mubr.f32.mxu0 %v153_v56  ;;  %v162_v18 = vsub.f32 %v7717_v15, %v161_v58 }
  0xa1   :  { %v163_v12 = vand.u32 4294901760, %v162_v18 }
  0xa3   :  { %5929 = vmatmul.mubr.f32.vlgmr.msra.gmra.mrb[0].mxu0 %v163_v12 }
  0xa4   :  { %6735 = vmatpush3.bf16.msra.mxu0 %v7585_v1  ;;  %5963 = vmatprep.mubr.msk.f32.mxu0 %vm62_vm1, %v7429_v62  ;;  %v8309_v1 = vand.u32 4294901760, %v7533_v3  ;;  %v8315_v3 = vand.u32 4294901760, %v7593_v52 }
  0xa5   :  { %6737 = vmatprep.subr.bf16.mxu0 %v7507_v48 }
  0xa8   :  { %6739 = vmatpush3.bf16.msra.mxu0 %v7507_v48  ;;  %v6828_v48 = vpack.c.bf16 %v179_v61, %v172_v60  ;;  %v6836_v60 = vpack.c.bf16 %v8306_v46, %v8305_v45 }
  0xa9   :  { %6741 = vmatprep.subr.bf16.mxu0 %v7537_v6 }
  0xac   :  { %6743 = vmatpush3.bf16.msra.mxu0 %v7537_v6  ;;  %v8303_v6 = vand.u32 4294901760, %v7477_v24  ;;  %v8307_v24 = vand.u32 4294901760, %v7512_v50  ;;  %v8313_v50 = vand.u32 4294901760, %v7574_v32 }
  0xad   :  { %6745 = vmatprep.subr.bf16.mxu0 %v7551_v17 }
  0xb0   :  { %6747 = vmatpush3.bf16.msra.mxu0 %v7551_v17  ;;  %v8304_v17 = vand.u32 4294901760, %v7479_v25  ;;  %v8308_v25 = vand.u32 4294901760, %v7514_v51  ;;  %v8314_v51 = vand.u32 4294901760, %v7576_v36 }
  0xb1   :  { %6749 = vmatprep.subr.bf16.mxu0 %v7569_v49 }
  0xb2   :  { %v6840_v61 = vpack.c.bf16 %v8308_v25, %v8307_v24 }
  0xb4   :  { %6751 = vmatpush3.bf16.msra.mxu0 %v7569_v49  ;;  %v6832_v49 = vpack.c.bf16 %v8304_v17, %v8303_v6 }
  0xb5   :  { %6753 = vmatprep.subr.bf16.mxu0 %v7597_v7 }
  0xb8   :  { %6755 = vmatpush3.bf16.msra.mxu0 %v7597_v7  ;;  %v8310_v7 = vand.u32 4294901760, %v7535_v4  ;;  %v8316_v4 = vand.u32 4294901760, %v7595_v54 }
  0xb9   :  { %6757 = vmatprep.subr.bf16.mxu0 %v7603_v20 }
  0xbc   :  { %6759 = vmatpush3.bf16.msra.mxu0 %v7603_v20  ;;  %v6844_v20 = vpack.c.bf16 %v8310_v7, %v8309_v1 }
  0xbd   :  { %6761 = vmatprep.subr.bf16.mxu0 %v7611_v23 }
  0xc0   :  { %6763 = vmatpush3.bf16.msra.mxu0 %v7611_v23  ;;  %v6848_v23 = vpack.c.bf16 %v8312_v37, %v8311_v35 }
  0xc1   :  { %6765 = vmatprep.subr.bf16.mxu0 %v7615_v30 }
  0xc3   :  { %5964 = vmatmul.mubr.msk.f32.vlgmr.msra.gmra.mrb[0].mxu0 %vm63_vm2, %v7429_v62 }
  0xc4   :  { %6767 = vmatpush3.bf16.msra.mxu0 %v7615_v30  ;;  %5998 = vmatprep.mubr.f32.mxu0 %v7704_v41  ;;  %v6852_v30 = vpack.c.bf16 %v8314_v51, %v8313_v50 }
  0xc5   :  { %6769 = vmatprep.subr.bf16.mxu0 %v7619_v34 }
  0xc8   :  { %6771 = vmatpush3.bf16.msra.mxu0 %v7619_v34  ;;  %v6856_v34 = vpack.c.bf16 %v8316_v4, %v8315_v3 }
  0xc9   :  { %6773 = vmatprep.subr.bf16.mxu0 %v7623_v40 }
  0xcc   :  { %6775 = vmatpush3.bf16.msra.mxu0 %v7623_v40 }
  0xcd   :  { %6777 = vmatprep.subr.bf16.mxu0 %v7627_v26 }
  0xd0   :  { %6779 = vmatpush3.bf16.msra.mxu0 %v7627_v26 }
  0xd1   :  { %6781 = vmatprep.subr.bf16.mxu0 %v7631_v38 }
  0xd4   :  { %6783 = vmatpush3.bf16.msra.mxu0 %v7631_v38 }
  0xd5   :  { %6785 = vmatprep.subr.bf16.mxu0 %v7635_v53 }
  0xd8   :  { %6787 = vmatpush3.bf16.msra.mxu0 %v7635_v53 }
  0xd9   :  { %6789 = vmatprep.subr.bf16.mxu0 %v7639_v2 }
  0xdc   :  { %6791 = vmatpush3.bf16.msra.mxu0 %v7639_v2 }
  0xdd   :  { %6793 = vmatprep.subr.bf16.mxu0 %v7643_v39 }
  0xe0   :  { %6795 = vmatpush3.bf16.msra.mxu0 %v7643_v39 }
  0xe1   :  { %6797 = vmatprep.subr.bf16.mxu0 %v7468_v13 }
  0xe3   :  { %5999 = vmatmul.mubr.f32.vlgmr.msra.gmra.mrb[0].mxu0 %v7717_v15 }
  0xe4   :  { %6799 = vmatpush3.bf16.msra.mxu0 %v7468_v13  ;;  %6033 = vmatprep.mubr.f32.mxu0 %v151_v8 }
  0xe5   :  { %6801 = vmatprep.subr.bf16.mxu0 %v7470_v14 }
  0xe8   :  { %6803 = vmatpush3.bf16.msra.mxu0 %v7470_v14 }
  0xe9   :  { %6805 = vmatprep.subr.bf16.mxu0 %v7475_v19 }
  0xec   :  { %6807 = vmatpush3.bf16.msra.mxu0 %v7475_v19 }
  0xed   :  { %6809 = vmatprep.subr.bf16.mxu0 %v7485_v29 }
  0xf0   :  { %6811 = vmatpush3.bf16.msra.mxu0 %v7485_v29 }
  0xf1   :  { %6813 = vmatprep.subr.bf16.mxu0 %v7500_v43 }
  0xf4   :  { %6815 = vmatpush3.bf16.msra.mxu0 %v7500_v43 }
  0xf5   :  { %6817 = vmatprep.subr.bf16.mxu0 %v7523_v59 }
  0xf8   :  { %6819 = vmatpush3.bf16.msra.mxu0 %v7523_v59 }
  0xf9   :  { %6821 = vmatprep.subr.bf16.mxu0 %v7543_v11 }
  0xfc   :  { %6823 = vmatpush3.bf16.msra.mxu0 %v7543_v11 }
  0xfd   :  { %6825 = vmatprep.subr.bf16.mxu0 %v7566_v33 }
 0x100   :  { %6827 = vmatpush3.bf16.msra.mxu0 %v7566_v33 }
 0x101   :  { %6829 = vmatprep.subr.bf16.mxu0 %v6828_v48 }
 0x103   :  { %6034 = vmatmul.mubr.f32.vlgmr.msra.gmra.mrb[0].mxu0 %v161_v58 }
 0x104   :  { %6831 = vmatpush3.bf16.msra.mxu0 %v6828_v48  ;;  %6068 = vmatprep.mubr.msk.f32.mxu0 %vm62_vm1, %v7429_v62 }
 0x105   :  { %6833 = vmatprep.subr.bf16.mxu0 %v6832_v49 }
 0x108   :  { %6835 = vmatpush3.bf16.msra.mxu0 %v6832_v49 }
 0x109   :  { %6837 = vmatprep.subr.bf16.mxu0 %v6836_v60 }
 0x10c   :  { %6839 = vmatpush3.bf16.msra.mxu0 %v6836_v60 }
 0x10d   :  { %6841 = vmatprep.subr.bf16.mxu0 %v6840_v61 }
 0x110   :  { %6843 = vmatpush3.bf16.msra.mxu0 %v6840_v61 }
 0x111   :  { %6845 = vmatprep.subr.bf16.mxu0 %v6844_v20 }
 0x114   :  { %6847 = vmatpush3.bf16.msra.mxu0 %v6844_v20 }
 0x115   :  { %6849 = vmatprep.subr.bf16.mxu0 %v6848_v23 }
 0x118   :  { %6851 = vmatpush3.bf16.msra.mxu0 %v6848_v23 }
 0x119   :  { %6853 = vmatprep.subr.bf16.mxu0 %v6852_v30 }
 0x11c   :  { %6855 = vmatpush3.bf16.msra.mxu0 %v6852_v30 }
 0x11d   :  { %6857 = vmatprep.subr.bf16.mxu0 %v6856_v34 }
 0x120   :  { %6859 = vmatpush3.bf16.msra.mxu0 %v6856_v34 }
 0x121   :  { %6861 = vmatprep.subr.bf16.mxu0 %v7468_v13 }
 0x123   :  { %6069 = vmatmul.mubr.msk.f32.vlgmr.msra.gmra.mrb[0].mxu0 %vm63_vm2, %v7429_v62 }
 0x124   :  { %6863 = vmatpush3.bf16.msra.mxu0 %v7468_v13  ;;  %6103 = vmatprep.mubr.msk.f32.mxu0 %vm62_vm1, %v7429_v62  ;;  %v831_v13 = vpop.f32.mrb[0].mxu1 }
 0x125   :  { %6865 = vmatprep.subr.bf16.mxu0 %v7470_v14 }
 0x128   :  { %6867 = vmatpush3.bf16.msra.mxu0 %v7470_v14  ;;  %v6116_v14 = vpop.f32.mrb[1].mxu1 }
 0x129   :  { %6869 = vmatprep.subr.bf16.mxu0 %v7475_v19 }
 0x12c   :  { %6871 = vmatpush3.bf16.msra.mxu0 %v7475_v19  ;;  %v922_v19 = vpop.f32.mrb[2].mxu1 }
 0x12d   :  { %6873 = vmatprep.subr.bf16.mxu0 %v7485_v29 }
 0x130   :  { %6875 = vmatpush3.bf16.msra.mxu0 %v7485_v29  ;;  %v923_v29 = vadd.f32 %v922_v19, %v831_v13 }
 0x131   :  { %6877 = vmatprep.subr.bf16.mxu0 %v7500_v43 }
 0x134   :  { %6879 = vmatpush3.bf16.msra.mxu0 %v7500_v43  ;;  %v6127_v43 = vpop.f32.mrb[3].mxu1 }
 0x135   :  { %6881 = vmatprep.subr.bf16.mxu0 %v7523_v59 }
 0x138   :  { %6883 = vmatpush3.bf16.msra.mxu0 %v7523_v59  ;;  %v1002_v59 = vpop.f32.mrb[4].mxu1 }
 0x139   :  { %6885 = vmatprep.subr.bf16.mxu0 %v7543_v11  ;;  %v6138_v21 = vpop.f32.mrb[5].mxu1 }
 0x13a   :  { %v1079_v22 = vpop.f32.mrb[6].mxu1 }
 0x13b   :  { %v6149_v32 = vpop.f32.mrb[7].mxu1 }
 0x13c   :  { %6887 = vmatpush3.bf16.msra.mxu0 %v7543_v11  ;;  %v1003_v11 = vadd.f32 %v1002_v59, %v923_v29  ;;  %v1162_v36 = vpop.f32.mrb[8].mxu1 }
 0x13d   :  { %6889 = vmatprep.subr.bf16.mxu0 %v7566_v33  ;;  %v6160_v54 = vpop.f32.mrb[9].mxu1 }
 0x13e   :  { %v1237_v40 = vpop.f32.mrb[10].mxu1 }
 0x13f   :  { %v6171_v38 = vpop.f32.mrb[11].mxu1 }
 0x140   :  { %6891 = vmatpush3.bf16.msra.mxu0 %v7566_v33  ;;  %v1080_v33 = vadd.f32 %v1079_v22, %v1003_v11 }
 0x141   :  { %7036 = vmatprep.subr.bf16.mxu0 %v7426_v63 }
 0x142   :  { %v1163_v52 = vadd.f32 %v1162_v36, %v1080_v33 }
 0x143   :  { %6104 = vmatmul.mubr.msk.f32.vlgmr.msra.gmra.mrb[0].mxu0 %vm63_vm2, %v7429_v62 }
 0x144   :  { %7038 = vmatpush3.bf16.msra.mxu0 %v7646_v5  ;;  %6378 = vmatprep.mubr.msk.f32.mxu0 %vm7427_vm0, %v7428_v42  ;;  %v1238_v26 = vadd.f32 %v1237_v40, %v1163_v52 }
 0x145   :  { %7039 = vmatprep.subr.bf16.mxu0 %v7426_v63 }
 0x148   :  { %7041 = vmatpush3.bf16.msra.mxu0 %v7650_v10 }
 0x149   :  { %7048 = vmatprep.subr.bf16.mxu0 %v7426_v63 }
 0x216   :  { %v7868_v53 = vpop.f32.mrb[0].mxu0 }
 0x217   :  { %v7870_v2 = vpop.f32.mrb[1].mxu0 }
 0x218   :  { %v1241_v39 = vadd.f32 %v1238_v26, %v7870_v2 }
 0x21a   :  { %7310 = vtanh.f32 %v1241_v39  ;;  %v5509_v57 = vmul.f32 -1.442695, %v1241_v39 }
 0x21c   :  { %7312 = vpow2.f32 %v5509_v57 }
 0x224   :  { %v7311_v0 = vpop.eup %7310 }
 0x225   :  { %1251 = vrot.lane.b32.xlu1 %v7311_v0, %s7430_s1 }
 0x226   :  { %v7313_v41 = vpop.eup %7312 }
 0x227   :  { %v1245_v44 = vadd.f32 1.0, %v7313_v41 }
 0x229   :  { %7314 = vrcp.f32 %v1245_v44 }
 0x233   :  { %v7315_v8 = vpop.eup %7314 }
 0x234   :  { %v1249_v56 = vmul.f32 0.0, %v7315_v8 }
 0x297   :  { %v1252_v15 = vpop.permute.xlu1 %1251 }
 0x298   :  { %v1254_v55 = vmul.f32 %v7315_v8, %v1252_v15 }
 0x29a   :  { %1256 = vrot.lane.b32.xlu1 %v1254_v55, %s7430_s1 }
 0x30c   :  { %v1257_v58 = vpop.permute.xlu1 %1256 }
 0x30d   :  { %v7875_v18 = vadd.f32 %v1257_v58, %v1249_v56 }
 0x30f   :  { %7316 = vtanh.f32 %v7875_v18  ;;  %v1775_v3 = vrot.slane %v7875_v18, 6 }
 0x319   :  { %v7317_v12 = vpop.eup %7316 }
 0x31a   :  { %1262 = vrot.lane.b32.xlu0 %v7317_v12, %s7430_s1 }
 0x38c   :  { %v1263_v62 = vpop.permute.xlu0 %1262 }
 0x38d   :  { %v7879_v48 = vmul.f32 %v7315_v8, %v1263_v62 }
 0x38f   :  { %1274 = vrot.lane.b32.xlu1 %v7879_v48, %s7431_s27 }
 0x401   :  { %v1275_v6 = vpop.permute.xlu1 %1274 }
 0x402   :  { %v1276_v17 = vsel %vm752_vm3, %v1275_v6, 0 }
 0x403   :  { %v1347_v49 = vand.u32 4294901760, %v1276_v17 }
 0x405   :  { %v1348_v45 = vsub.f32 %v1276_v17, %v1347_v49 }
 0x407   :  { %v1349_v46 = vand.u32 4294901760, %v1348_v45 }
 0x409   :  { %v1350_v60 = vsub.f32 %v1348_v45, %v1349_v46 }
 0x40b   :  { %v1351_v24 = vand.u32 4294901760, %v1350_v60 }
 0x40d   :  { %6181 = vmatmul.mubr.f32.vlgmr.msra.gmra.mrb[12].mxu1 %v1351_v24 }
 0x40e   :  { %6936 = vmatpush3.bf16.msra.mxu1 %v7656_v28  ;;  %6191 = vmatprep.mubr.msk.f32.mxu1 %vm7427_vm0, %v7428_v42 }
 0x40f   :  { %6937 = vmatprep.subr.bf16.mxu1 %v7426_v63 }
 0x412   :  { %6939 = vmatpush3.bf16.msra.mxu1 %v7663_v9 }
 0x413   :  { %6940 = vmatprep.subr.bf16.mxu1 %v7426_v63 }
 0x415   :  { %6192 = vmatmul.mubr.f32.vlgmr.msra.gmra.mrb[12].mxu1 %v1347_v49 }
 0x416   :  { %6942 = vmatpush3.bf16.msra.mxu1 %v7667_v16  ;;  %6202 = vmatprep.mubr.msk.f32.mxu1 %vm7427_vm0, %v7428_v42 }
 0x417   :  { %6943 = vmatprep.subr.bf16.mxu1 %v7426_v63 }
 0x41a   :  { %6945 = vmatpush3.bf16.msra.mxu1 %v7674_v27 }
 0x41b   :  { %6946 = vmatprep.subr.bf16.mxu1 %v7426_v63 }
 0x41d   :  { %6203 = vmatmul.mubr.f32.vlgmr.msra.gmra.mrb[12].mxu1 %v1348_v45 }
 0x41e   :  { %6948 = vmatpush3.bf16.msra.mxu1 %v7646_v5  ;;  %6213 = vmatprep.mubr.msk.f32.mxu1 %vm7427_vm0, %v7428_v42 }
 0x41f   :  { %6949 = vmatprep.subr.bf16.mxu1 %v7426_v63 }
 0x422   :  { %6951 = vmatpush3.bf16.msra.mxu1 %v7650_v10 }
 0x423   :  { %6952 = vmatprep.subr.bf16.mxu1 %v7426_v63 }
 0x425   :  { %6214 = vmatmul.mubr.f32.vlgmr.msra.gmra.mrb[12].mxu1 %v1349_v46 }
 0x426   :  { %6954 = vmatpush3.bf16.msra.mxu1 %v7687_v47  ;;  %6224 = vmatprep.mubr.msk.f32.mxu1 %vm7427_vm0, %v7428_v42 }
 0x427   :  { %6955 = vmatprep.subr.bf16.mxu1 %v7426_v63 }
 0x42a   :  { %6957 = vmatpush3.bf16.msra.mxu1 %v7702_v31 }
 0x42b   :  { %6958 = vmatprep.subr.bf16.mxu1 %v7426_v63 }
 0x42d   :  { %6225 = vmatmul.mubr.f32.vlgmr.msra.gmra.mrb[12].mxu1 %v1347_v49 }
 0x42e   :  { %6960 = vmatpush3.bf16.msra.mxu1 %v7646_v5  ;;  %6235 = vmatprep.mubr.msk.f32.mxu1 %vm7427_vm0, %v7428_v42 }
 0x42f   :  { %6961 = vmatprep.subr.bf16.mxu1 %v7426_v63 }
 0x432   :  { %6963 = vmatpush3.bf16.msra.mxu1 %v7650_v10 }
 0x433   :  { %6964 = vmatprep.subr.bf16.mxu1 %v7426_v63 }
 0x435   :  { %6236 = vmatmul.mubr.f32.vlgmr.msra.gmra.mrb[12].mxu1 %v1347_v49 }
 0x436   :  { %6966 = vmatpush3.bf16.msra.mxu1 %v7646_v5  ;;  %6246 = vmatprep.mubr.msk.f32.mxu1 %vm7427_vm0, %v7428_v42 }
 0x437   :  { %6967 = vmatprep.subr.bf16.mxu1 %v7426_v63 }
 0x43a   :  { %6969 = vmatpush3.bf16.msra.mxu1 %v7650_v10 }
 0x43b   :  { %6970 = vmatprep.subr.bf16.mxu1 %v7426_v63 }
 0x508   :  { %v1759_v25 = vpop.f32.mrb[12].mxu1 }
 0x509   :  { %v1764_v61 = vrot.slane %v1759_v25, 6  ;;  %v6237_v1 = vpop.f32.mrb[13].mxu1 }
 0x50b   :  { %v1766_v7 = vadd.f32 %v1764_v61, %v7870_v2 }
 0x50d   :  { %7318 = vtanh.f32 %v1766_v7  ;;  %v5510_v35 = vmul.f32 -1.442695, %v1766_v7 }
 0x50f   :  { %7320 = vpow2.f32 %v5510_v35 }
 0x517   :  { %v7319_v20 = vpop.eup %7318 }
 0x518   :  { %1779 = vrot.lane.b32.xlu0 %v7319_v20, %s7430_s1 }
 0x519   :  { %v7321_v37 = vpop.eup %7320 }
 0x51a   :  { %v1770_v23 = vadd.f32 1.0, %v7321_v37 }
 0x51c   :  { %7322 = vrcp.f32 %v1770_v23 }
 0x526   :  { %v7323_v50 = vpop.eup %7322 }
 0x527   :  { %v1777_v4 = vmul.f32 %v7323_v50, %v1775_v3 }
 0x58a   :  { %v1780_v51 = vpop.permute.xlu0 %1779 }
 0x58b   :  { %v1782_v30 = vmul.f32 %v7323_v50, %v1780_v51 }
 0x58d   :  { %1784 = vrot.lane.b32.xlu1 %v1782_v30, %s7430_s1 }
 0x5ff   :  { %v1785_v34 = vpop.permute.xlu1 %1784 }
 0x600   :  { %v7924_v13 = vadd.f32 %v1785_v34, %v1777_v4 }
 0x602   :  { %7324 = vtanh.f32 %v7924_v13  ;;  %v2309_v15 = vrot.slane %v7924_v13, 6 }
 0x60c   :  { %v7325_v14 = vpop.eup %7324 }
 0x60d   :  { %1790 = vrot.lane.b32.xlu0 %v7325_v14, %s7430_s1 }
 0x67f   :  { %v1791_v19 = vpop.permute.xlu0 %1790 }
 0x680   :  { %v1793_v29 = vmul.f32 %v7323_v50, %v1791_v19 }
 0x682   :  { %v1801_v43 = vrot.slane %v1793_v29, 2 }
 0x684   :  { %1802 = vrot.lane.b32.xlu1 %v1801_v43, %s7431_s27 }
 0x6f6   :  { %v7929_v59 = vpop.permute.xlu1 %1802 }
 0x6f7   :  { %v1810_v11 = vsel %vm752_vm3, %v7929_v59, 0 }
 0x6f8   :  { %v1881_v21 = vand.u32 4294901760, %v1810_v11 }
 0x6fa   :  { %v1882_v22 = vsub.f32 %v1810_v11, %v1881_v21 }
 0x6fc   :  { %v1883_v33 = vand.u32 4294901760, %v1882_v22 }
 0x6fe   :  { %v1884_v32 = vsub.f32 %v1882_v22, %v1883_v33 }
 0x700   :  { %v1885_v36 = vand.u32 4294901760, %v1884_v32 }
 0x702   :  { %6247 = vmatmul.mubr.f32.vlgmr.msra.gmra.mrb[14].mxu1 %v1885_v36 }
 0x703   :  { %6972 = vmatpush3.bf16.msra.mxu1 %v7656_v28  ;;  %6257 = vmatprep.mubr.msk.f32.mxu1 %vm7427_vm0, %v7428_v42 }
 0x704   :  { %6973 = vmatprep.subr.bf16.mxu1 %v7426_v63 }
 0x707   :  { %6975 = vmatpush3.bf16.msra.mxu1 %v7663_v9 }
 0x708   :  { %6976 = vmatprep.subr.bf16.mxu1 %v7426_v63 }
 0x70a   :  { %6258 = vmatmul.mubr.f32.vlgmr.msra.gmra.mrb[14].mxu1 %v1881_v21 }
 0x70b   :  { %6978 = vmatpush3.bf16.msra.mxu1 %v7667_v16  ;;  %6268 = vmatprep.mubr.msk.f32.mxu1 %vm7427_vm0, %v7428_v42 }
 0x70c   :  { %6979 = vmatprep.subr.bf16.mxu1 %v7426_v63 }
 0x70f   :  { %6981 = vmatpush3.bf16.msra.mxu1 %v7674_v27 }
 0x710   :  { %6982 = vmatprep.subr.bf16.mxu1 %v7426_v63 }
 0x712   :  { %6269 = vmatmul.mubr.f32.vlgmr.msra.gmra.mrb[14].mxu1 %v1882_v22 }
 0x713   :  { %6984 = vmatpush3.bf16.msra.mxu1 %v7646_v5  ;;  %6279 = vmatprep.mubr.msk.f32.mxu1 %vm7427_vm0, %v7428_v42 }
 0x714   :  { %6985 = vmatprep.subr.bf16.mxu1 %v7426_v63 }
 0x717   :  { %6987 = vmatpush3.bf16.msra.mxu1 %v7650_v10 }
 0x718   :  { %6988 = vmatprep.subr.bf16.mxu1 %v7426_v63 }
 0x71a   :  { %6280 = vmatmul.mubr.f32.vlgmr.msra.gmra.mrb[14].mxu1 %v1883_v33 }
 0x71b   :  { %6990 = vmatpush3.bf16.msra.mxu1 %v7687_v47  ;;  %6290 = vmatprep.mubr.msk.f32.mxu1 %vm7427_vm0, %v7428_v42 }
 0x71c   :  { %6991 = vmatprep.subr.bf16.mxu1 %v7426_v63 }
 0x71f   :  { %6993 = vmatpush3.bf16.msra.mxu1 %v7702_v31 }
 0x720   :  { %6994 = vmatprep.subr.bf16.mxu1 %v7426_v63 }
 0x722   :  { %6291 = vmatmul.mubr.f32.vlgmr.msra.gmra.mrb[14].mxu1 %v1881_v21 }
 0x723   :  { %6996 = vmatpush3.bf16.msra.mxu1 %v7646_v5  ;;  %6301 = vmatprep.mubr.msk.f32.mxu1 %vm7427_vm0, %v7428_v42 }
 0x724   :  { %6997 = vmatprep.subr.bf16.mxu1 %v7426_v63 }
 0x727   :  { %6999 = vmatpush3.bf16.msra.mxu1 %v7650_v10 }
 0x728   :  { %7000 = vmatprep.subr.bf16.mxu1 %v7426_v63 }
 0x72a   :  { %6302 = vmatmul.mubr.f32.vlgmr.msra.gmra.mrb[14].mxu1 %v1881_v21 }
 0x72b   :  { %7002 = vmatpush3.bf16.msra.mxu1 %v7646_v5  ;;  %6312 = vmatprep.mubr.msk.f32.mxu1 %vm7427_vm0, %v7428_v42 }
 0x72c   :  { %7003 = vmatprep.subr.bf16.mxu1 %v7426_v63 }
 0x72f   :  { %7005 = vmatpush3.bf16.msra.mxu1 %v7650_v10 }
 0x730   :  { %7006 = vmatprep.subr.bf16.mxu1 %v7426_v63 }
 0x7fd   :  { %v2293_v52 = vpop.f32.mrb[14].mxu1 }
 0x7fe   :  { %v2298_v54 = vrot.slane %v2293_v52, 4  ;;  %v6303_v40 = vpop.f32.mrb[15].mxu1 }
 0x800   :  { %v2300_v26 = vadd.f32 %v2298_v54, %v7870_v2 }
 0x802   :  { %7326 = vtanh.f32 %v2300_v26  ;;  %v5511_v39 = vmul.f32 -1.442695, %v2300_v26 }
 0x804   :  { %7328 = vpow2.f32 %v5511_v39 }
 0x80c   :  { %v7327_v38 = vpop.eup %7326 }
 0x80d   :  { %2313 = vrot.lane.b32.xlu0 %v7327_v38, %s7430_s1 }
 0x80e   :  { %v7329_v0 = vpop.eup %7328 }
 0x80f   :  { %v2304_v57 = vadd.f32 1.0, %v7329_v0 }
 0x811   :  { %7330 = vrcp.f32 %v2304_v57 }
 0x81b   :  { %v7331_v41 = vpop.eup %7330 }
 0x81c   :  { %v2311_v55 = vmul.f32 %v7331_v41, %v2309_v15 }
 0x87f   :  { %v2314_v44 = vpop.permute.xlu0 %2313 }
 0x880   :  { %v2316_v8 = vmul.f32 %v7331_v41, %v2314_v44 }
 0x882   :  { %2318 = vrot.lane.b32.xlu1 %v2316_v8, %s7430_s1 }
 0x8f4   :  { %v2319_v56 = vpop.permute.xlu1 %2318 }
 0x8f5   :  { %v7973_v58 = vadd.f32 %v2319_v56, %v2311_v55 }
 0x8f7   :  { %7332 = vtanh.f32 %v7973_v58  ;;  %v2839_v4 = vrot.slane %v7973_v58, 6 }
 0x901   :  { %v7333_v18 = vpop.eup %7332 }
 0x902   :  { %2324 = vrot.lane.b32.xlu0 %v7333_v18, %s7430_s1 }
 0x974   :  { %v2325_v12 = vpop.permute.xlu0 %2324 }
 0x975   :  { %v2327_v62 = vmul.f32 %v7331_v41, %v2325_v12 }
 0x977   :  { %v2335_v6 = vrot.slane %v2327_v62, 4 }
 0x979   :  { %2336 = vrot.lane.b32.xlu1 %v2335_v6, %s7431_s27 }
 0x9eb   :  { %v7978_v17 = vpop.permute.xlu1 %2336 }
 0x9ec   :  { %v2340_v49 = vsel %vm752_vm3, %v7978_v17, 0 }
 0x9ed   :  { %v2411_v45 = vand.u32 4294901760, %v2340_v49 }
 0x9ef   :  { %v2412_v46 = vsub.f32 %v2340_v49, %v2411_v45 }
 0x9f1   :  { %v2413_v60 = vand.u32 4294901760, %v2412_v46 }
 0x9f3   :  { %v2414_v24 = vsub.f32 %v2412_v46, %v2413_v60 }
 0x9f5   :  { %v2415_v25 = vand.u32 4294901760, %v2414_v24 }
 0x9f7   :  { %6313 = vmatmul.mubr.f32.vlgmr.msra.gmra.mrb[16].mxu1 %v2415_v25 }
 0x9f8   :  { %7008 = vmatpush3.bf16.msra.mxu1 %v7656_v28  ;;  %6323 = vmatprep.mubr.msk.f32.mxu1 %vm7427_vm0, %v7428_v42 }
 0x9f9   :  { %7009 = vmatprep.subr.bf16.mxu1 %v7426_v63 }
 0x9fc   :  { %7011 = vmatpush3.bf16.msra.mxu1 %v7663_v9 }
 0x9fd   :  { %7012 = vmatprep.subr.bf16.mxu1 %v7426_v63 }
 0x9ff   :  { %6324 = vmatmul.mubr.f32.vlgmr.msra.gmra.mrb[16].mxu1 %v2411_v45 }
 0xa00   :  { %7014 = vmatpush3.bf16.msra.mxu1 %v7667_v16  ;;  %6334 = vmatprep.mubr.msk.f32.mxu1 %vm7427_vm0, %v7428_v42 }
 0xa01   :  { %7015 = vmatprep.subr.bf16.mxu1 %v7426_v63 }
 0xa04   :  { %7017 = vmatpush3.bf16.msra.mxu1 %v7674_v27 }
 0xa05   :  { %7018 = vmatprep.subr.bf16.mxu1 %v7426_v63 }
 0xa07   :  { %6335 = vmatmul.mubr.f32.vlgmr.msra.gmra.mrb[16].mxu1 %v2412_v46 }
 0xa08   :  { %7020 = vmatpush3.bf16.msra.mxu1 %v7646_v5  ;;  %6345 = vmatprep.mubr.msk.f32.mxu1 %vm7427_vm0, %v7428_v42 }
 0xa09   :  { %7021 = vmatprep.subr.bf16.mxu1 %v7426_v63 }
 0xa0c   :  { %7023 = vmatpush3.bf16.msra.mxu1 %v7650_v10 }
 0xa0d   :  { %7024 = vmatprep.subr.bf16.mxu1 %v7426_v63 }
 0xa0f   :  { %6346 = vmatmul.mubr.f32.vlgmr.msra.gmra.mrb[16].mxu1 %v2413_v60 }
 0xa10   :  { %7026 = vmatpush3.bf16.msra.mxu1 %v7687_v47  ;;  %6356 = vmatprep.mubr.msk.f32.mxu1 %vm7427_vm0, %v7428_v42 }
 0xa11   :  { %7027 = vmatprep.subr.bf16.mxu1 %v7426_v63 }
 0xa14   :  { %7029 = vmatpush3.bf16.msra.mxu1 %v7702_v31 }
 0xa15   :  { %7030 = vmatprep.subr.bf16.mxu1 %v7426_v63 }
 0xa17   :  { %6357 = vmatmul.mubr.f32.vlgmr.msra.gmra.mrb[16].mxu1 %v2411_v45 }
 0xa18   :  { %7032 = vmatpush3.bf16.msra.mxu1 %v7646_v5  ;;  %6367 = vmatprep.mubr.msk.f32.mxu1 %vm7427_vm0, %v7428_v42 }
 0xa19   :  { %7033 = vmatprep.subr.bf16.mxu1 %v7426_v63 }
 0xa1c   :  { %7035 = vmatpush3.bf16.msra.mxu1 %v7650_v10 }
 0xa1d   :  { %7042 = vmatprep.subr.bf16.mxu1 %v7426_v63 }
 0xa1f   :  { %6368 = vmatmul.mubr.f32.vlgmr.msra.gmra.mrb[16].mxu1 %v2411_v45 }
 0xa20   :  { %7044 = vmatpush3.bf16.msra.mxu1 %v7656_v28  ;;  %6389 = vmatprep.mubr.msk.f32.mxu1 %vm7427_vm0, %v7428_v42 }
 0xa21   :  { %7045 = vmatprep.subr.bf16.mxu1 %v7426_v63 }
 0xa24   :  { %7047 = vmatpush3.bf16.msra.mxu1 %v7663_v9 }
 0xa25   :  { %7054 = vmatprep.subr.bf16.mxu1 %v7426_v63 }
 0xaf2   :  { %v2823_v61 = vpop.f32.mrb[16].mxu1 }
 0xaf3   :  { %v2828_v1 = vrot.slane %v2823_v61, 2  ;;  %v6369_v7 = vpop.f32.mrb[17].mxu1 }
 0xaf5   :  { %v2830_v20 = vadd.f32 %v2828_v1, %v7870_v2 }
 0xaf7   :  { %7334 = vtanh.f32 %v2830_v20  ;;  %v5512_v37 = vmul.f32 -1.442695, %v2830_v20 }
 0xaf9   :  { %7336 = vpow2.f32 %v5512_v37 }
 0xb01   :  { %v7335_v35 = vpop.eup %7334 }
 0xb02   :  { %2843 = vrot.lane.b32.xlu0 %v7335_v35, %s7430_s1 }
 0xb03   :  { %v7337_v23 = vpop.eup %7336 }
 0xb04   :  { %v2834_v50 = vadd.f32 1.0, %v7337_v23 }
 0xb06   :  { %7338 = vrcp.f32 %v2834_v50 }
 0xb10   :  { %v7339_v51 = vpop.eup %7338 }
 0xb11   :  { %v2841_v34 = vmul.f32 %v7339_v51, %v2839_v4 }
 0xb74   :  { %v2844_v30 = vpop.permute.xlu0 %2843 }
 0xb75   :  { %v2846_v3 = vmul.f32 %v7339_v51, %v2844_v30 }
 0xb77   :  { %2848 = vrot.lane.b32.xlu1 %v2846_v3, %s7430_s1 }
 0xbe9   :  { %v2849_v13 = vpop.permute.xlu1 %2848 }
 0xbea   :  { %v8022_v14 = vadd.f32 %v2849_v13, %v2841_v34 }
 0xbec   :  { %7340 = vtanh.f32 %v8022_v14  ;;  %v3366_v1 = vrot.slane %v8022_v14, 6 }
 0xbf6   :  { %v7341_v2 = vpop.eup %7340 }
 0xbf7   :  { %2854 = vrot.lane.b32.xlu0 %v7341_v2, %s7430_s1 }
 0xc69   :  { %v2855_v19 = vpop.permute.xlu0 %2854 }
 0xc6a   :  { %v2857_v29 = vmul.f32 %v7339_v51, %v2855_v19 }
 0xc6c   :  { %v2865_v43 = vrot.slane %v2857_v29, 6 }
 0xc6e   :  { %2866 = vrot.lane.b32.xlu1 %v2865_v43, %s7431_s27 }
 0xce0   :  { %v8027_v11 = vpop.permute.xlu1 %2866 }
 0xce1   :  { %v2870_v21 = vsel %vm752_vm3, %v8027_v11, 0 }
 0xce2   :  { %v2941_v22 = vand.u32 4294901760, %v2870_v21 }
 0xce4   :  { %v2942_v33 = vsub.f32 %v2870_v21, %v2941_v22  ;;  %6390 = vmatmul.mubr.f32.vlgmr.msra.gmra.mrb[18].mxu1 %v2941_v22 }
 0xce5   :  { %7056 = vmatpush3.bf16.msra.mxu1 %v7646_v5  ;;  %6411 = vmatprep.mubr.msk.f32.mxu1 %vm7427_vm0, %v7428_v42 }
 0xce6   :  { %v2943_v32 = vand.u32 4294901760, %v2942_v33  ;;  %7057 = vmatprep.subr.bf16.mxu1 %v7426_v63 }
 0xce8   :  { %v2944_v36 = vsub.f32 %v2942_v33, %v2943_v32 }
 0xce9   :  { %7059 = vmatpush3.bf16.msra.mxu1 %v7650_v10 }
 0xcea   :  { %7066 = vmatprep.subr.bf16.mxu1 %v7426_v63  ;;  %v2945_v52 = vand.u32 4294901760, %v2944_v36 }
 0xcec   :  { %6412 = vmatmul.mubr.f32.vlgmr.msra.gmra.mrb[20].mxu1 %v2943_v32  ;;  %6379 = vmatmul.mubr.f32.vlgmr.msra.gmra.mrb[2].mxu0 %v2945_v52 }
 0xced   :  { %7050 = vmatpush3.bf16.msra.mxu0 %v7667_v16  ;;  %7068 = vmatpush3.bf16.msra.mxu1 %v7646_v5 }
 0xcee   :  { %7051 = vmatprep.subr.bf16.mxu0 %v7426_v63  ;;  %7069 = vmatprep.subr.bf16.mxu1 %v7426_v63 }
 0xcef   :  { %6400 = vmatprep.mubr.msk.f32.mxu0 %vm7427_vm0, %v7428_v42  ;;  %6433 = vmatprep.mubr.msk.f32.mxu1 %vm7427_vm0, %v7428_v42 }
 0xcf1   :  { %7053 = vmatpush3.bf16.msra.mxu0 %v7674_v27  ;;  %7071 = vmatpush3.bf16.msra.mxu1 %v7650_v10 }
 0xcf2   :  { %7060 = vmatprep.subr.bf16.mxu0 %v7426_v63  ;;  %7108 = vmatprep.subr.bf16.mxu1 %v7426_v63 }
 0xcf4   :  { %6401 = vmatmul.mubr.f32.vlgmr.msra.gmra.mrb[4].mxu0 %v2942_v33  ;;  %6434 = vmatmul.mubr.f32.vlgmr.msra.gmra.mrb[22].mxu1 %v2941_v22 }
 0xcf5   :  { %7062 = vmatpush3.bf16.msra.mxu0 %v7687_v47  ;;  %6422 = vmatprep.mubr.msk.f32.mxu0 %vm7427_vm0, %v7428_v42 }
 0xcf6   :  { %7063 = vmatprep.subr.bf16.mxu0 %v7426_v63  ;;  %7110 = vmatpush3.bf16.msra.mxu1 %v7646_v5 }
 0xcf7   :  { %7111 = vmatprep.subr.bf16.mxu1 %v7426_v63  ;;  %6510 = vmatprep.mubr.msk.f32.mxu1 %vm7427_vm0, %v7428_v42 }
 0xcf9   :  { %7065 = vmatpush3.bf16.msra.mxu0 %v7702_v31 }
 0xcfa   :  { %7072 = vmatprep.subr.bf16.mxu0 %v7426_v63  ;;  %7113 = vmatpush3.bf16.msra.mxu1 %v7650_v10 }
 0xcfb   :  { %7114 = vmatprep.subr.bf16.mxu1 %v7426_v63 }
 0xcfc   :  { %6423 = vmatmul.mubr.f32.vlgmr.msra.gmra.mrb[6].mxu0 %v2941_v22 }
 0xcfd   :  { %7074 = vmatpush3.bf16.msra.mxu0 %v7646_v5  ;;  %6444 = vmatprep.mubr.msk.f32.mxu0 %vm7427_vm0, %v7428_v42 }
 0xcfe   :  { %7075 = vmatprep.subr.bf16.mxu0 %v7426_v63 }
 0xd01   :  { %7077 = vmatpush3.bf16.msra.mxu0 %v7650_v10 }
 0xd02   :  { %7078 = vmatprep.subr.bf16.mxu0 %v7426_v63 }
 0xdb7   :  { %v3038_v54 = vpop.f32.mrb[18].mxu1 }
 0xdb8   :  { %v6391_v40 = vpop.f32.mrb[19].mxu1 }
 0xdbf   :  { %v3195_v26 = vpop.f32.mrb[20].mxu1  ;;  %v2947_v38 = vpop.f32.mrb[2].mxu0 }
 0xdc0   :  { %v3039_v39 = vadd.f32 %v3038_v54, %v2947_v38  ;;  %v6413_v0 = vpop.f32.mrb[21].mxu1  ;;  %v6380_v57 = vpop.f32.mrb[3].mxu0 }
 0xdc7   :  { %v3118_v41 = vpop.f32.mrb[4].mxu0  ;;  %v3353_v44 = vpop.f32.mrb[22].mxu1 }
 0xdc8   :  { %v3119_v8 = vadd.f32 %v3118_v41, %v3039_v39  ;;  %v6402_v15 = vpop.f32.mrb[5].mxu0  ;;  %v6435_v55 = vpop.f32.mrb[23].mxu1 }
 0xdca   :  { %v3196_v56 = vadd.f32 %v3195_v26, %v3119_v8 }
 0xdcf   :  { %v3278_v58 = vpop.f32.mrb[6].mxu0 }
 0xdd0   :  { %v3279_v18 = vadd.f32 %v3278_v58, %v3196_v56  ;;  %v6424_v12 = vpop.f32.mrb[7].mxu0 }
 0xdd2   :  { %v3354_v62 = vadd.f32 %v3353_v44, %v3279_v18 }
 0xdd4   :  { %v3357_v6 = vadd.f32 %v7868_v53, %v3354_v62 }
 0xdd6   :  { %7342 = vtanh.f32 %v3357_v6  ;;  %v5513_v45 = vmul.f32 -1.442695, %v3357_v6 }
 0xdd8   :  { %7344 = vpow2.f32 %v5513_v45 }
 0xde0   :  { %v7343_v49 = vpop.eup %7342 }
 0xde1   :  { %3370 = vrot.lane.b32.xlu0 %v7343_v49, %s7430_s1 }
 0xde2   :  { %v7345_v46 = vpop.eup %7344 }
 0xde3   :  { %v3361_v60 = vadd.f32 1.0, %v7345_v46 }
 0xde5   :  { %7346 = vrcp.f32 %v3361_v60 }
 0xdef   :  { %v7347_v24 = vpop.eup %7346 }
 0xdf0   :  { %v3368_v7 = vmul.f32 %v7347_v24, %v3366_v1 }
 0xe53   :  { %v3371_v25 = vpop.permute.xlu0 %3370 }
 0xe54   :  { %v3373_v61 = vmul.f32 %v7347_v24, %v3371_v25 }
 0xe56   :  { %3375 = vrot.lane.b32.xlu1 %v3373_v61, %s7430_s1 }
 0xec8   :  { %v3376_v20 = vpop.permute.xlu1 %3375 }
 0xec9   :  { %v8071_v35 = vadd.f32 %v3376_v20, %v3368_v7 }
 0xecb   :  { %7348 = vtanh.f32 %v8071_v35  ;;  %v3898_v40 = vrot.slane %v8071_v35, 6 }
 0xed5   :  { %v7349_v37 = vpop.eup %7348 }
 0xed6   :  { %3381 = vrot.lane.b32.xlu0 %v7349_v37, %s7430_s1 }
 0xf48   :  { %v3382_v23 = vpop.permute.xlu0 %3381 }
 0xf49   :  { %v8075_v50 = vmul.f32 %v7347_v24, %v3382_v23 }
 0xf4b   :  { %3397 = vrot.lane.b32.xlu1 %v8075_v50, %s7431_s27 }
 0xfbd   :  { %v3398_v51 = vpop.permute.xlu1 %3397 }
 0xfbe   :  { %v3399_v30 = vsel %vm752_vm3, %v3398_v51, 0 }
 0xfbf   :  { %v3470_v3 = vand.u32 4294901760, %v3399_v30 }
 0xfc1   :  { %v3471_v4 = vsub.f32 %v3399_v30, %v3470_v3 }
 0xfc3   :  { %v3472_v34 = vand.u32 4294901760, %v3471_v4 }
 0xfc5   :  { %v3473_v13 = vsub.f32 %v3471_v4, %v3472_v34 }
 0xfc7   :  { %v3474_v14 = vand.u32 4294901760, %v3473_v13  ;;  %v8317_v13 = vmov 0  }
 0xfc9   :  { %6445 = vmatmul.mubr.f32.vlgmr.msra.gmra.mrb[8].mxu0 %v3474_v14 }
 0xfca   :  { %7080 = vmatpush3.bf16.msra.mxu0 %v7656_v28  ;;  %6455 = vmatprep.mubr.msk.f32.mxu0 %vm7427_vm0, %v7428_v42 }
 0xfcb   :  { %7081 = vmatprep.subr.bf16.mxu0 %v7426_v63 }
 0xfce   :  { %7083 = vmatpush3.bf16.msra.mxu0 %v7663_v9 }
 0xfcf   :  { %7084 = vmatprep.subr.bf16.mxu0 %v7426_v63 }
 0xfd1   :  { %6456 = vmatmul.mubr.f32.vlgmr.msra.gmra.mrb[8].mxu0 %v3470_v3 }
 0xfd2   :  { %7086 = vmatpush3.bf16.msra.mxu0 %v7667_v16  ;;  %6466 = vmatprep.mubr.msk.f32.mxu0 %vm7427_vm0, %v7428_v42 }
 0xfd3   :  { %7087 = vmatprep.subr.bf16.mxu0 %v7426_v63 }
 0xfd6   :  { %7089 = vmatpush3.bf16.msra.mxu0 %v7674_v27 }
 0xfd7   :  { %7090 = vmatprep.subr.bf16.mxu0 %v7426_v63 }
 0xfd9   :  { %6467 = vmatmul.mubr.f32.vlgmr.msra.gmra.mrb[8].mxu0 %v3471_v4 }
 0xfda   :  { %7092 = vmatpush3.bf16.msra.mxu0 %v7646_v5  ;;  %6477 = vmatprep.mubr.msk.f32.mxu0 %vm7427_vm0, %v7428_v42 }
 0xfdb   :  { %7093 = vmatprep.subr.bf16.mxu0 %v7426_v63 }
 0xfde   :  { %7095 = vmatpush3.bf16.msra.mxu0 %v7650_v10 }
 0xfdf   :  { %7096 = vmatprep.subr.bf16.mxu0 %v7426_v63 }
 0xfe1   :  { %6478 = vmatmul.mubr.f32.vlgmr.msra.gmra.mrb[8].mxu0 %v3472_v34 }
 0xfe2   :  { %7098 = vmatpush3.bf16.msra.mxu0 %v7687_v47  ;;  %6488 = vmatprep.mubr.msk.f32.mxu0 %vm7427_vm0, %v7428_v42 }
 0xfe3   :  { %7099 = vmatprep.subr.bf16.mxu0 %v7426_v63 }
 0xfe6   :  { %7101 = vmatpush3.bf16.msra.mxu0 %v7702_v31 }
 0xfe7   :  { %7102 = vmatprep.subr.bf16.mxu0 %v7426_v63 }
 0xfe9   :  { %6489 = vmatmul.mubr.f32.vlgmr.msra.gmra.mrb[8].mxu0 %v3470_v3 }
 0xfea   :  { %7104 = vmatpush3.bf16.msra.mxu0 %v7646_v5  ;;  %6499 = vmatprep.mubr.msk.f32.mxu0 %vm7427_vm0, %v7428_v42 }
 0xfeb   :  { %7105 = vmatprep.subr.bf16.mxu0 %v7426_v63 }
 0xfee   :  { %7107 = vmatpush3.bf16.msra.mxu0 %v7650_v10 }
 0xfef   :  { %7144 = vmatprep.subr.bf16.mxu0 %v7426_v63 }
 0xff1   :  { %6500 = vmatmul.mubr.f32.vlgmr.msra.gmra.mrb[8].mxu0 %v3470_v3  ;;  %v8172_v3 = vld [vmem:[%s8284_s0 + $0x10] sm:$0x3]  ;;  %s7432_s0 = smov [#allocation5]  }
 0xff2   :  { %7146 = vmatpush3.bf16.msra.mxu0 %v7646_v5  ;;  %6576 = vmatprep.mubr.msk.f32.mxu0 %vm7427_vm0, %v7428_v42  ;;  %vm1266_vm4 = vcmp.eq.s32.totalorder %v8172_v3, 1  ;;  %vm1794_vm5 = vcmp.eq.s32.totalorder %v8172_v3, 2  ;;  %vm2858_vm6 = vcmp.eq.s32.totalorder %v8172_v3, 4  ;;  %vm3385_vm7 = vcmp.eq.s32.totalorder %v8172_v3, 5  ;;  %s5492_s30 = sshll.u32 %s7432_s0, 4  ;;  %s5493_s30 = int_to_ptr.vmem [resolvable:$true] %s5492_s30 }
 0xff3   :  { %7147 = vmatprep.subr.bf16.mxu0 %v7426_v63  ;;  %v1267_v14 = vsel %vm1266_vm4, 1, %v8317_v13  ;;  %vm2328_vm8 = vcmp.eq.s32.totalorder %v8172_v3, 3  ;;  %vm3917_vm10 = vcmp.eq.s32.totalorder %v8172_v3, 6  ;;  %vm4981_vm11 = vcmp.eq.s32.totalorder %v8172_v3, 8  ;;  %s7396_s3 = scalar_lea.vmem %s5493_s30, 32  ;;  %p7401_p9 = scmp.lt.s32.totalorder %s5493_s30, %s5493_s30 }
 0xff4   :  { %vm4451_vm15 = vcmp.eq.s32.totalorder %v8172_v3, 7  ;;  %p7397_p8 = scmp.ne.s32.totalorder %s5493_s30, %s7396_s3  ;;  %p7402_p10 = scmp.lt.s32.totalorder %s7396_s3, %s7396_s3 }
 0xff6   :  { %7149 = vmatpush3.bf16.msra.mxu0 %v7650_v10  ;;  %p7403_p11 = por %p7402_p10, %p7401_p9 }
 0xff7   :  { %7150 = vmatprep.subr.bf16.mxu0 %v7426_v63 }
 0xff8   :  { %p7404_p12 = pnand %p7403_p11, %p7397_p8 }
0x10c4   :  { %v3882_v2 = vpop.f32.mrb[8].mxu0 }
0x10c5   :  { %v3887_v19 = vrot.slane %v3882_v2, 6  ;;  %v6501_v29 = vpop.f32.mrb[9].mxu0 }
0x10c7   :  { %v3889_v43 = vadd.f32 %v7868_v53, %v3887_v19 }
0x10c9   :  { %7350 = vtanh.f32 %v3889_v43  ;;  %v5514_v22 = vmul.f32 -1.442695, %v3889_v43 }
0x10cb   :  { %7352 = vpow2.f32 %v5514_v22 }
0x10d3   :  { %v7351_v21 = vpop.eup %7350 }
0x10d4   :  { %3902 = vrot.lane.b32.xlu0 %v7351_v21, %s7430_s1 }
0x10d5   :  { %v7353_v33 = vpop.eup %7352 }
0x10d6   :  { %v3893_v32 = vadd.f32 1.0, %v7353_v33 }
0x10d8   :  { %7354 = vrcp.f32 %v3893_v32 }
0x10e2   :  { %v7355_v36 = vpop.eup %7354 }
0x10e3   :  { %v3900_v26 = vmul.f32 %v7355_v36, %v3898_v40 }
0x1146   :  { %v3903_v52 = vpop.permute.xlu0 %3902 }
0x1147   :  { %v3905_v54 = vmul.f32 %v7355_v36, %v3903_v52 }
0x1149   :  { %3907 = vrot.lane.b32.xlu1 %v3905_v54, %s7430_s1 }
0x11bb   :  { %v3908_v38 = vpop.permute.xlu1 %3907 }
0x11bc   :  { %v8120_v39 = vadd.f32 %v3908_v38, %v3900_v26 }
0x11be   :  { %7356 = vtanh.f32 %v8120_v39  ;;  %v4432_v20 = vrot.slane %v8120_v39, 6  ;;  %v2329_v39 = vsel %vm2328_vm8, 1, %v8317_v13 }
0x11c8   :  { %v7357_v0 = vpop.eup %7356 }
0x11c9   :  { %3913 = vrot.lane.b32.xlu0 %v7357_v0, %s7430_s1 }
0x123b   :  { %v3914_v57 = vpop.permute.xlu0 %3913 }
0x123c   :  { %v3916_v41 = vmul.f32 %v7355_v36, %v3914_v57 }
0x123e   :  { %v3924_v44 = vrot.slane %v3916_v41, 2 }
0x1240   :  { %3925 = vrot.lane.b32.xlu1 %v3924_v44, %s7431_s27 }
0x12b2   :  { %v8125_v8 = vpop.permute.xlu1 %3925 }
0x12b3   :  { %v3933_v15 = vsel %vm752_vm3, %v8125_v8, 0 }
0x12b4   :  { %v4004_v55 = vand.u32 4294901760, %v3933_v15 }
0x12b6   :  { %v4005_v56 = vsub.f32 %v3933_v15, %v4004_v55 }
0x12b8   :  { %v4006_v58 = vand.u32 4294901760, %v4005_v56 }
0x12ba   :  { %v4007_v18 = vsub.f32 %v4005_v56, %v4006_v58 }
0x12bc   :  { %v4008_v12 = vand.u32 4294901760, %v4007_v18 }
0x12be   :  { %6511 = vmatmul.mubr.f32.vlgmr.msra.gmra.mrb[24].mxu1 %v4008_v12 }
0x12bf   :  { %7116 = vmatpush3.bf16.msra.mxu1 %v7656_v28  ;;  %6521 = vmatprep.mubr.msk.f32.mxu1 %vm7427_vm0, %v7428_v42 }
0x12c0   :  { %7117 = vmatprep.subr.bf16.mxu1 %v7426_v63 }
0x12c3   :  { %7119 = vmatpush3.bf16.msra.mxu1 %v7663_v9 }
0x12c4   :  { %7120 = vmatprep.subr.bf16.mxu1 %v7426_v63 }
0x12c6   :  { %6522 = vmatmul.mubr.f32.vlgmr.msra.gmra.mrb[24].mxu1 %v4004_v55 }
0x12c7   :  { %7122 = vmatpush3.bf16.msra.mxu1 %v7667_v16  ;;  %6532 = vmatprep.mubr.msk.f32.mxu1 %vm7427_vm0, %v7428_v42 }
0x12c8   :  { %7123 = vmatprep.subr.bf16.mxu1 %v7426_v63 }
0x12cb   :  { %7125 = vmatpush3.bf16.msra.mxu1 %v7674_v27 }
0x12cc   :  { %7126 = vmatprep.subr.bf16.mxu1 %v7426_v63 }
0x12ce   :  { %6533 = vmatmul.mubr.f32.vlgmr.msra.gmra.mrb[24].mxu1 %v4005_v56 }
0x12cf   :  { %7128 = vmatpush3.bf16.msra.mxu1 %v7646_v5  ;;  %6543 = vmatprep.mubr.msk.f32.mxu1 %vm7427_vm0, %v7428_v42 }
0x12d0   :  { %7129 = vmatprep.subr.bf16.mxu1 %v7426_v63 }
0x12d3   :  { %7131 = vmatpush3.bf16.msra.mxu1 %v7650_v10 }
0x12d4   :  { %7132 = vmatprep.subr.bf16.mxu1 %v7426_v63 }
0x12d6   :  { %6544 = vmatmul.mubr.f32.vlgmr.msra.gmra.mrb[24].mxu1 %v4006_v58 }
0x12d7   :  { %7134 = vmatpush3.bf16.msra.mxu1 %v7687_v47  ;;  %6554 = vmatprep.mubr.msk.f32.mxu1 %vm7427_vm0, %v7428_v42 }
0x12d8   :  { %7135 = vmatprep.subr.bf16.mxu1 %v7426_v63 }
0x12db   :  { %7137 = vmatpush3.bf16.msra.mxu1 %v7702_v31 }
0x12dc   :  { %7138 = vmatprep.subr.bf16.mxu1 %v7426_v63 }
0x12de   :  { %6555 = vmatmul.mubr.f32.vlgmr.msra.gmra.mrb[24].mxu1 %v4004_v55 }
0x12df   :  { %7140 = vmatpush3.bf16.msra.mxu1 %v7646_v5  ;;  %6565 = vmatprep.mubr.msk.f32.mxu1 %vm7427_vm0, %v7428_v42 }
0x12e0   :  { %7141 = vmatprep.subr.bf16.mxu1 %v7426_v63 }
0x12e3   :  { %7143 = vmatpush3.bf16.msra.mxu1 %v7650_v10 }
0x12e4   :  { %7180 = vmatprep.subr.bf16.mxu1 %v7426_v63 }
0x12e6   :  { %6566 = vmatmul.mubr.f32.vlgmr.msra.gmra.mrb[24].mxu1 %v4004_v55  ;;  %v3918_v55 = vsel %vm3917_vm10, 1, %v8317_v13 }
0x12e7   :  { %6642 = vmatprep.mubr.msk.f32.mxu1 %vm7427_vm0, %v7428_v42 }
0x13b9   :  { %v4416_v62 = vpop.f32.mrb[24].mxu1 }
0x13ba   :  { %v4421_v6 = vrot.slane %v4416_v62, 4  ;;  %v6567_v49 = vpop.f32.mrb[25].mxu1 }
0x13bc   :  { %v4423_v45 = vadd.f32 %v7868_v53, %v4421_v6 }
0x13be   :  { %7358 = vtanh.f32 %v4423_v45  ;;  %v5515_v60 = vmul.f32 -1.442695, %v4423_v45  ;;  %v4452_v45 = vsel %vm4451_vm15, 1, %v8317_v13 }
0x13c0   :  { %7360 = vpow2.f32 %v5515_v60 }
0x13c8   :  { %v7359_v46 = vpop.eup %7358 }
0x13c9   :  { %4436 = vrot.lane.b32.xlu0 %v7359_v46, %s7430_s1 }
0x13ca   :  { %v7361_v24 = vpop.eup %7360 }
0x13cb   :  { %v4427_v25 = vadd.f32 1.0, %v7361_v24  ;;  %v46_v24 = vld [vmem:[#allocation2 + $0xa0] sm:$0xff] }
0x13cd   :  { %7362 = vrcp.f32 %v4427_v25  ;;  %v47_v25 = vld [vmem:[#allocation2 + $0xa8] sm:$0xff] }
0x13d7   :  { %v7363_v61 = vpop.eup %7362 }
0x13d8   :  { %v4434_v35 = vmul.f32 %v7363_v61, %v4432_v20 }
0x143b   :  { %v4437_v1 = vpop.permute.xlu0 %4436 }
0x143c   :  { %v4439_v7 = vmul.f32 %v7363_v61, %v4437_v1  ;;  %v5001_v1 = vand.u32 4294901760, %v46_v24 }
0x143e   :  { %4441 = vrot.lane.b32.xlu1 %v4439_v7, %s7430_s1 }
0x14b0   :  { %v4442_v37 = vpop.permute.xlu1 %4441 }
0x14b1   :  { %v8165_v23 = vadd.f32 %v4442_v37, %v4434_v35  ;;  %v48_v35 = vld [vmem:[#allocation2 + $0xb0] sm:$0xff] }
0x14b3   :  { %7364 = vtanh.f32 %v8165_v23  ;;  %v4962_v0 = vrot.slane %v8165_v23, 6  ;;  %v5007_v23 = vand.u32 4294901760, %v48_v35 }
0x14bd   :  { %v7365_v51 = vpop.eup %7364 }
0x14be   :  { %4447 = vrot.lane.b32.xlu0 %v7365_v51, %s7430_s1 }
0x1530   :  { %v4448_v30 = vpop.permute.xlu0 %4447 }
0x1531   :  { %v4450_v4 = vmul.f32 %v7363_v61, %v4448_v30 }
0x1533   :  { %v4458_v34 = vrot.slane %v4450_v4, 4 }
0x1535   :  { %4459 = vrot.lane.b32.xlu1 %v4458_v34, %s7431_s27  ;;  %v5095_v34 = vsub.f32 %v48_v35, %v5007_v23 }
0x1539   :  { %1269 = vperm.xlu1 %7309, %v1267_v14  }
0x15a7   :  { %v8177_v2 = vpop.permute.xlu1 %4459 }
0x15a8   :  { %v4463_v19 = vsel %vm752_vm3, %v8177_v2, 0 }
0x15a9   :  { %v4534_v29 = vand.u32 4294901760, %v4463_v19 }
0x15ab   :  { %v4535_v43 = vsub.f32 %v4463_v19, %v4534_v29 }
0x15ad   :  { %v4536_v21 = vand.u32 4294901760, %v4535_v43 }
0x15af   :  { %v4537_v22 = vsub.f32 %v4535_v43, %v4536_v21 }
0x15b1   :  { %v4538_v33 = vand.u32 4294901760, %v4537_v22 }
0x15b3   :  { %6577 = vmatmul.mubr.f32.vlgmr.msra.gmra.mrb[10].mxu0 %v4538_v33 }
0x15b4   :  { %7152 = vmatpush3.bf16.msra.mxu0 %v7656_v28  ;;  %6587 = vmatprep.mubr.msk.f32.mxu0 %vm7427_vm0, %v7428_v42  ;;  %v1795_v28 = vsel %vm1794_vm5, 1, %v8317_v13 }
0x15b5   :  { %7153 = vmatprep.subr.bf16.mxu0 %v7426_v63  ;;  %1797 = vperm.xlu1 %7309, %v1795_v28  }
0x15b8   :  { %7155 = vmatpush3.bf16.msra.mxu0 %v7663_v9  ;;  %v2859_v9 = vsel %vm2858_vm6, 1, %v8317_v13  ;;  %v1270_v38 = vpop.permute.xlu1 %1269 }
0x15b9   :  { %7156 = vmatprep.subr.bf16.mxu0 %v7426_v63  ;;  %2861 = vperm.xlu1 %7309, %v2859_v9   ;;  %vm1271_vm9 = vcmp.eq.s32.totalorder %v1270_v38, 1 }
0x15bb   :  { %6588 = vmatmul.mubr.f32.vlgmr.msra.gmra.mrb[10].mxu0 %v4534_v29 }
0x15bc   :  { %7158 = vmatpush3.bf16.msra.mxu0 %v7667_v16  ;;  %6598 = vmatprep.mubr.msk.f32.mxu0 %vm7427_vm0, %v7428_v42 }
0x15bd   :  { %7159 = vmatprep.subr.bf16.mxu0 %v7426_v63 }
0x15c0   :  { %7161 = vmatpush3.bf16.msra.mxu0 %v7674_v27 }
0x15c1   :  { %7162 = vmatprep.subr.bf16.mxu0 %v7426_v63 }
0x15c3   :  { %6599 = vmatmul.mubr.f32.vlgmr.msra.gmra.mrb[10].mxu0 %v4535_v43 }
0x15c4   :  { %7164 = vmatpush3.bf16.msra.mxu0 %v7646_v5  ;;  %6609 = vmatprep.mubr.msk.f32.mxu0 %vm7427_vm0, %v7428_v42 }
0x15c5   :  { %7165 = vmatprep.subr.bf16.mxu0 %v7426_v63 }
0x15c8   :  { %7167 = vmatpush3.bf16.msra.mxu0 %v7650_v10 }
0x15c9   :  { %7168 = vmatprep.subr.bf16.mxu0 %v7426_v63 }
0x15cb   :  { %6610 = vmatmul.mubr.f32.vlgmr.msra.gmra.mrb[10].mxu0 %v4536_v21  ;;  %v5096_v21 = vand.u32 4294901760, %v5095_v34 }
0x15cc   :  { %7170 = vmatpush3.bf16.msra.mxu0 %v7687_v47  ;;  %6620 = vmatprep.mubr.msk.f32.mxu0 %vm7427_vm0, %v7428_v42 }
0x15cd   :  { %7171 = vmatprep.subr.bf16.mxu0 %v7426_v63  ;;  %v5097_v9 = vsub.f32 %v5095_v34, %v5096_v21 }
0x15d0   :  { %7173 = vmatpush3.bf16.msra.mxu0 %v7702_v31 }
0x15d1   :  { %7174 = vmatprep.subr.bf16.mxu0 %v7426_v63 }
0x15d3   :  { %6621 = vmatmul.mubr.f32.vlgmr.msra.gmra.mrb[10].mxu0 %v4534_v29 }
0x15d4   :  { %7176 = vmatpush3.bf16.msra.mxu0 %v7646_v5  ;;  %6631 = vmatprep.mubr.msk.f32.mxu0 %vm7427_vm0, %v7428_v42  ;;  %v3386_v5 = vsel %vm3385_vm7, 1, %v8317_v13 }
0x15d5   :  { %7177 = vmatprep.subr.bf16.mxu0 %v7426_v63  ;;  %3388 = vperm.xlu1 %7309, %v3386_v5  }
0x15d8   :  { %7179 = vmatpush3.bf16.msra.mxu0 %v7650_v10 }
0x15db   :  { %6632 = vmatmul.mubr.f32.vlgmr.msra.gmra.mrb[10].mxu0 %v4534_v29 }
0x1634   :  { %v1798_v56 = vpop.permute.xlu1 %1797 }
0x1635   :  { %vm1799_vm12 = vcmp.eq.s32.totalorder %v1798_v56, 1 }
0x1638   :  { %v2862_v12 = vpop.permute.xlu1 %2861 }
0x1639   :  { %vm2863_vm14 = vcmp.eq.s32.totalorder %v2862_v12, 1 }
0x1654   :  { %v3389_v37 = vpop.permute.xlu1 %3388 }
0x1655   :  { %vm3390_vm1 = vcmp.eq.s32.totalorder %v3389_v37, 1 }
0x16ae   :  { %v4946_v16 = vpop.f32.mrb[10].mxu0 }
0x16af   :  { %v4951_v27 = vrot.slane %v4946_v16, 2  ;;  %v6633_v47 = vpop.f32.mrb[11].mxu0 }
0x16b1   :  { %v4953_v10 = vadd.f32 %v7868_v53, %v4951_v27  ;;  %v1272_v53 = vsel %vm1271_vm9, %v7879_v48, 0.0  ;;  %v4982_v48 = vsel %vm4981_vm11, 1, %v8317_v13  ;;  %v5098_v27 = vand.u32 4294901760, %v5097_v9 }
0x16b3   :  { %7366 = vtanh.f32 %v4953_v10  ;;  %v5516_v32 = vmul.f32 -1.442695, %v4953_v10 }
0x16b5   :  { %7368 = vpow2.f32 %v5516_v32 }
0x16bd   :  { %v7367_v31 = vpop.eup %7366 }
0x16be   :  { %4966 = vrot.lane.b32.xlu0 %v7367_v31, %s7430_s1 }
0x16bf   :  { %v7369_v36 = vpop.eup %7368 }
0x16c0   :  { %v4957_v52 = vadd.f32 1.0, %v7369_v36 }
0x16c2   :  { %7370 = vrcp.f32 %v4957_v52 }
0x16cc   :  { %v7371_v54 = vpop.eup %7370 }
0x16cd   :  { %v4964_v57 = vmul.f32 %v7371_v54, %v4962_v0 }
0x1730   :  { %v4967_v40 = vpop.permute.xlu0 %4966 }
0x1731   :  { %v4969_v26 = vmul.f32 %v7371_v54, %v4967_v40 }
0x1733   :  { %4971 = vrot.lane.b32.xlu0 %v4969_v26, %s7430_s1 }
0x1737   :  { %2331 = vperm.xlu0 %7308, %v2329_v39  }
0x173b   :  { %1806 = vrot.lane.b32.xlu0 %v1272_v53, %s7431_s27 }
0x17a5   :  { %v4972_v41 = vpop.permute.xlu0 %4971 }
0x17a6   :  { %v4974_v44 = vadd.f32 %v4972_v41, %v4964_v57 }
0x17a8   :  { %7372 = vtanh.f32 %v4974_v44 }
0x17b2   :  { %v7373_v15 = vpop.eup %7372 }
0x17b3   :  { %4977 = vrot.lane.b32.xlu0 %v7373_v15, %s7430_s1 }
0x17b6   :  { %v2332_v58 = vpop.permute.xlu0 %2331 }
0x17b7   :  { %3920 = vperm.xlu0 %7308, %v3918_v55   ;;  %vm2333_vm13 = vcmp.eq.s32.totalorder %v2332_v58, 1 }
0x17ba   :  { %v1807_v18 = vpop.permute.xlu0 %1806 }
0x17bb   :  { %v1809_v62 = vsel %vm1799_vm12, %v7929_v59, %v1807_v18  ;;  %4984 = vperm.xlu0 %7308, %v4982_v48   ;;  %v5004_v59 = vand.u32 4294901760, %v47_v25 }
0x17bc   :  { %v2339_v6 = vsel %vm2333_vm13, %v7978_v17, %v1809_v62  ;;  %v5081_v17 = vsub.f32 %v46_v24, %v5001_v1 }
0x17bd   :  { %v2869_v49 = vsel %vm2863_vm14, %v8027_v11, %v2339_v6  ;;  %v8236_v7 = vpack.c.bf16 %v5004_v59, %v5001_v1  ;;  %v5088_v20 = vsub.f32 %v47_v25, %v5004_v59  ;;  %v49_v11 = vld [vmem:[#allocation2 + $0xb8] sm:$0xff] }
0x17be   :  { %3392 = vrot.lane.b32.xlu1 %v2869_v49, %s7431_s27  ;;  %v5010_v51 = vand.u32 4294901760, %v49_v11  ;;  %v5082_v30 = vand.u32 4294901760, %v5081_v17 }
0x17bf   :  { %7182 = vmatpush3.bf16.msra.mxu1 %v8236_v7  ;;  %v5089_v3 = vand.u32 4294901760, %v5088_v20  ;;  %v7193_v31 = vpack.c.bf16 %v5088_v20, %v5081_v17 }
0x17c0   :  { %7183 = vmatprep.subr.bf16.mxu1 %v7426_v63  ;;  %v8240_v4 = vpack.c.bf16 %v5010_v51, %v5007_v23  ;;  %v5102_v13 = vsub.f32 %v49_v11, %v5010_v51  ;;  %v5083_v14 = vsub.f32 %v5081_v17, %v5082_v30 }
0x17c1   :  { %v5090_v19 = vsub.f32 %v5088_v20, %v5089_v3  ;;  %v7205_v36 = vpack.c.bf16 %v5089_v3, %v5082_v30 }
0x17c2   :  { %4454 = vperm.xlu1 %7309, %v4452_v45   ;;  %v5084_v43 = vand.u32 4294901760, %v5083_v14  ;;  %v5103_v22 = vand.u32 4294901760, %v5102_v13  ;;  %v7196_v32 = vpack.c.bf16 %v5102_v13, %v5095_v34 }
0x17c3   :  { %7185 = vmatpush3.bf16.msra.mxu1 %v8240_v4  ;;  %v5091_v28 = vand.u32 4294901760, %v5090_v19 }
0x17c4   :  { %7186 = vmatprep.subr.bf16.mxu1 %v7426_v63  ;;  %v5104_v5 = vsub.f32 %v5102_v13, %v5103_v22  ;;  %v7208_v52 = vpack.c.bf16 %v5103_v22, %v5096_v21 }
0x17c5   :  { %v7187_v16 = vpack.c.bf16 %v5091_v28, %v5084_v43 }
0x17c6   :  { %v5105_v47 = vand.u32 4294901760, %v5104_v5 }
0x17c8   :  { %v7190_v10 = vpack.c.bf16 %v5105_v47, %v5098_v27 }
0x1825   :  { %v4978_v46 = vpop.permute.xlu0 %4977 }
0x1826   :  { %v4980_v60 = vmul.f32 %v7371_v54, %v4978_v46 }
0x1828   :  { %v4988_v61 = vrot.slane %v4980_v60, 6 }
0x182a   :  { %4989 = vrot.lane.b32.xlu0 %v4988_v61, %s7431_s27 }
0x1830   :  { %v3393_v29 = vpop.permute.xlu1 %3392 }
0x1831   :  { %v3395_v33 = vsel %vm3390_vm1, %v8075_v50, %v3393_v29 }
0x1832   :  { %3929 = vrot.lane.b32.xlu1 %v3395_v33, %s7431_s27 }
0x1836   :  { %v3921_v54 = vpop.permute.xlu0 %3920 }
0x1837   :  { %vm3922_vm2 = vcmp.eq.s32.totalorder %v3921_v54, 1 }
0x183a   :  { %v4985_v26 = vpop.permute.xlu0 %4984 }
0x183b   :  { %vm4986_vm5 = vcmp.eq.s32.totalorder %v4985_v26, 1 }
0x1841   :  { %v4455_v40 = vpop.permute.xlu1 %4454 }
0x1842   :  { %vm4456_vm4 = vcmp.eq.s32.totalorder %v4455_v40, 1 }
0x189c   :  { %v4990_v39 = vpop.permute.xlu0 %4989 }
0x18a4   :  { %v3930_v50 = vpop.permute.xlu1 %3929 }
0x18a5   :  { %v3932_v38 = vsel %vm3922_vm2, %v8125_v8, %v3930_v50  ;;  %v5517_v8 = vld [vmem:[#allocation2 + $0xc0] ss:$0 sm:$0xff] }
0x18a6   :  { %v4462_v53 = vsel %vm4456_vm4, %v8177_v2, %v3932_v38 }
0x18a7   :  { %v4992_v0 = vsel %vm4986_vm5, %v4990_v39, %v4462_v53 }
0x18a8   :  { %v4998_v57 = vsel %vm752_vm3, %v4992_v0, 0 }
0x18a9   :  { %v5069_v41 = vand.u32 4294901760, %v4998_v57 }
0x18ab   :  { %v5070_v44 = vsub.f32 %v4998_v57, %v5069_v41 }
0x18ad   :  { %v5071_v15 = vand.u32 4294901760, %v5070_v44 }
0x18af   :  { %v5072_v55 = vsub.f32 %v5070_v44, %v5071_v15 }
0x18b1   :  { %v5073_v56 = vand.u32 4294901760, %v5072_v55 }
0x18b3   :  { %6643 = vmatmul.mubr.f32.vlgmr.msra.gmra.mrb[26].mxu1 %v5073_v56 }
0x18b4   :  { %7188 = vmatpush3.bf16.msra.mxu1 %v7187_v16  ;;  %6653 = vmatprep.mubr.msk.f32.mxu1 %vm7427_vm0, %v7428_v42 }
0x18b5   :  { %7189 = vmatprep.subr.bf16.mxu1 %v7426_v63 }
0x18b8   :  { %7191 = vmatpush3.bf16.msra.mxu1 %v7190_v10 }
0x18b9   :  { %7192 = vmatprep.subr.bf16.mxu1 %v7426_v63 }
0x18bb   :  { %6654 = vmatmul.mubr.f32.vlgmr.msra.gmra.mrb[26].mxu1 %v5069_v41 }
0x18bc   :  { %7194 = vmatpush3.bf16.msra.mxu1 %v7193_v31  ;;  %6664 = vmatprep.mubr.msk.f32.mxu1 %vm7427_vm0, %v7428_v42 }
0x18bd   :  { %7195 = vmatprep.subr.bf16.mxu1 %v7426_v63 }
0x18c0   :  { %7197 = vmatpush3.bf16.msra.mxu1 %v7196_v32 }
0x18c1   :  { %7198 = vmatprep.subr.bf16.mxu1 %v7426_v63 }
0x18c3   :  { %6665 = vmatmul.mubr.f32.vlgmr.msra.gmra.mrb[26].mxu1 %v5070_v44 }
0x18c4   :  { %7200 = vmatpush3.bf16.msra.mxu1 %v8236_v7  ;;  %6675 = vmatprep.mubr.msk.f32.mxu1 %vm7427_vm0, %v7428_v42 }
0x18c5   :  { %7201 = vmatprep.subr.bf16.mxu1 %v7426_v63 }
0x18c8   :  { %7203 = vmatpush3.bf16.msra.mxu1 %v8240_v4 }
0x18c9   :  { %7204 = vmatprep.subr.bf16.mxu1 %v7426_v63 }
0x18cb   :  { %6676 = vmatmul.mubr.f32.vlgmr.msra.gmra.mrb[26].mxu1 %v5071_v15 }
0x18cc   :  { %7206 = vmatpush3.bf16.msra.mxu1 %v7205_v36  ;;  %6686 = vmatprep.mubr.msk.f32.mxu1 %vm7427_vm0, %v7428_v42 }
0x18cd   :  { %7207 = vmatprep.subr.bf16.mxu1 %v7426_v63 }
0x18d0   :  { %7209 = vmatpush3.bf16.msra.mxu1 %v7208_v52 }
0x18d1   :  { %7210 = vmatprep.subr.bf16.mxu1 %v7426_v63 }
0x18d3   :  { %6687 = vmatmul.mubr.f32.vlgmr.msra.gmra.mrb[26].mxu1 %v5069_v41 }
0x18d4   :  { %7212 = vmatpush3.bf16.msra.mxu1 %v8236_v7  ;;  %6697 = vmatprep.mubr.msk.f32.mxu1 %vm7427_vm0, %v7428_v42 }
0x18d5   :  { %7213 = vmatprep.subr.bf16.mxu1 %v7426_v63 }
0x18d8   :  { %7215 = vmatpush3.bf16.msra.mxu1 %v8240_v4 }
0x18db   :  { %6698 = vmatmul.mubr.f32.vlgmr.msra.gmra.mrb[26].mxu1 %v5069_v41 }
0x19ae   :  { %v5481_v2 = vpop.f32.mrb[26].mxu1 }
0x19af   :  { %v7216_v58 = vadd.f32 %v5517_v8, %v5481_v2  ;;  %v6699_v48 = vpop.f32.mrb[27].mxu1 }
0x19b1   :  { %5485 = vst [vmem:[#allocation5] sm:$0x3] %v7216_v58 }
0x19b2   :  { %7407 = shalt.err (!%p7404_p12)
}
0x19b3   :  { %s7408_s6 = scalar_lea.hbm %s8286_s2, 32 }
0x19b4   :  { %p7409_p13 = scmp.ne.s32.totalorder %s8286_s2, %s7408_s6  ;;  %p7412_p0 = scmp.lt.u32.totalorder %s7408_s6, %s8286_s2 }
0x19b6   :  { %p7414_p1 = pnand %p7412_p0, %p7409_p13 }
0x19b8   :  { %7417 = shalt.err (!%p7414_p1)
}
0x19b9   :  { %5495 = dma.vmem_to_hbm [thread:$0]  %s5493_s30, 32, %s8286_s2, [#allocation4]  }
0x19ba   :  { %7420 = dma.done.wait [#allocation4], 32  }
0x19bb   :  { %7421 = vsyncadd [#allocation4], 4294967264 }
0x19bc   :  { %5499 = vsyncpa [#allocation3], 1 }
0x19bd   :  { %5500 = vsyncpa [#allocation4], 1 }

</bundles_post_ra>
